<compile_context>
chip_gen: v7x
topology: tpu7x:2x2x1
jax: 0.10.0
libtpu: 0.0.40
codegen_flags: <defaults>
</compile_context>

<pallas_src>
import jax
import jax.numpy as jnp
from jax import lax
from jax.experimental import pallas as pl
from jax.experimental.pallas import tpu as pltpu


# --------------------------------------------------------------------------- #
# Kernel
# --------------------------------------------------------------------------- #
def discriminator_kernel(x_ref, w1_ref, b1_ref, w2_ref, b2_ref, w3_ref, b3_ref,
                         o_ref):
    # x:  (tile_b, d_in) f32 (cast to bf16 in-kernel)
    # w1: (d_in, 512) bf16      b1: (1, 512) f32
    # w2: (512, 256) bf16       b2: (1, 256) f32
    # w3: (1, 256)  f32         b3: (1, 1)  f32
    # o:  (1, 1, tile_b) f32    (lane-dense: batch rows on lanes)
    x = x_ref[...].astype(jnp.bfloat16)

    # Layer 1: MXU matmul (bf16 inputs, f32 accumulation) + bias + LeakyReLU(0.2).
    h1 = jnp.dot(x, w1_ref[...], preferred_element_type=jnp.float32) + b1_ref[...]
    h1 = jnp.where(h1 > 0, h1, 0.2 * h1)

    # Layer 2.
    h2 = jnp.dot(h1.astype(jnp.bfloat16), w2_ref[...],
                 preferred_element_type=jnp.float32) + b2_ref[...]
    h2 = jnp.where(h2 > 0, h2, 0.2 * h2)

    # Head (256 -> 1), computed transposed so the result is lane-dense (1, tile_b):
    # logits[0, r] = sum_k w3[0, k] * h2[r, k]
    logits = lax.dot_general(w3_ref[...], h2, (((1,), (1,)), ((), ())),
                             preferred_element_type=jnp.float32) + b3_ref[...]

    # Sigmoid: exp + approx reciprocal both land on the (otherwise idle) EUP slot.
    sig = pl.reciprocal(1.0 + jnp.exp(-logits), approx=True)
    o_ref[...] = sig.reshape(o_ref.shape)


# --------------------------------------------------------------------------- #
# Wrapper
# --------------------------------------------------------------------------- #
def _round_up(x, m):
    return ((x + m - 1) // m) * m


def _pick_tile_b(B, d_in):
    """Batch tile: big (128-512) when possible, VMEM-budgeted, >=2 tiles for B>=16."""
    # Budget for the double-buffered f32 activation tile (keeps v7x's 64 MiB happy
    # even for large d_in such as 3*64*64, alongside the single-buffered bf16 w1).
    x_budget_bytes = 24 * 1024 * 1024
    cap = max(8, (x_budget_bytes // (2 * 4 * d_in)) // 8 * 8)
    if B < 16:
        return min(_round_up(B, 8), cap)
    # At least two batch tiles so ("parallel",) can use both TensorCores on v7x.
    return max(16, min(512, cap, _round_up(pl.cdiv(B, 2), 16)))


def _pallas_forward(x, w1, b1, w2, b2, w3, b3, *, tile_b, nb, single_buffer_weights):
    d_in = x.shape[1]
    h1_dim = w1.shape[1]
    h2_dim = w2.shape[1]

    if single_buffer_weights:
        # Constant index maps -> double-buffering these is pure VMEM waste.
        def resident(shape):
            return pl.BlockSpec(shape, lambda i: (0, 0), pipeline_mode=pl.Buffered(1))
    else:
        def resident(shape):
            return pl.BlockSpec(shape, lambda i: (0, 0))

    rows = nb * tile_b
    flops = 2 * rows * (d_in * h1_dim + h1_dim * h2_dim + h2_dim)
    bytes_accessed = (
        x.size * x.dtype.itemsize
        + w1.size * 2 + w2.size * 2
        + (b1.size + b2.size + w3.size + b3.size) * 4
        + rows * 4
    )
    cost = pl.CostEstimate(flops=flops, transcendentals=2 * rows,
                           bytes_accessed=bytes_accessed)

    return pl.pallas_call(
        discriminator_kernel,
        out_shape=jax.ShapeDtypeStruct((nb, 1, tile_b), jnp.float32),
        grid_spec=pltpu.PrefetchScalarGridSpec(
            num_scalar_prefetch=0,
            grid=(nb,),
            in_specs=[
                pl.BlockSpec((tile_b, d_in), lambda i: (i, 0)),  # x tile (pipelined)
                resident((d_in, h1_dim)),                        # w1 (VMEM resident)
                resident((1, h1_dim)),                           # b1
                resident((h1_dim, h2_dim)),                      # w2
                resident((1, h2_dim)),                           # b2
                resident((1, h2_dim)),                           # w3 row
                resident((1, 1)),                                # b3
            ],
            out_specs=pl.BlockSpec((1, 1, tile_b), lambda i: (i, 0, 0)),
        ),
        compiler_params=pltpu.CompilerParams(
            dimension_semantics=("parallel",),        # v7x: batch tiles over 2 TCs
            vmem_limit_bytes=48 * 1024 * 1024,
        ),
        cost_estimate=cost,
    )(x, w1, b1, w2, b2, w3, b3)


_SINGLE_BUFFER_OK = None  # memo: does this jax build accept pl.Buffered(1)?


def discriminator_forward(img, kparams):
    """img: (B, C, H, W) float32; kparams from prepare_params. Returns (B, 1) f32."""
    global _SINGLE_BUFFER_OK
    w1, b1, w2, b2, w3, b3 = kparams
    B = img.shape[0]
    d_in = w1.shape[0]

    x = img.reshape(B, -1)                 # same as torch img.view(B, -1); no copy
    assert x.shape[1] == d_in, "img size inconsistent with the discriminator params"

    tile_b = _pick_tile_b(B, d_in)
    nb = pl.cdiv(B, tile_b)

    if _SINGLE_BUFFER_OK is None:
        try:
            out = _pallas_forward(x, w1, b1, w2, b2, w3, b3,
                                  tile_b=tile_b, nb=nb, single_buffer_weights=True)
            _SINGLE_BUFFER_OK = True
        except Exception:
            # This jax build rejects buffer_count=1; fall back to default buffering.
            _SINGLE_BUFFER_OK = False
            out = _pallas_forward(x, w1, b1, w2, b2, w3, b3,
                                  tile_b=tile_b, nb=nb, single_buffer_weights=False)
    else:
        out = _pallas_forward(x, w1, b1, w2, b2, w3, b3,
                              tile_b=tile_b, nb=nb,
                              single_buffer_weights=_SINGLE_BUFFER_OK)

    # Lane-dense (nb, 1, tile_b) -> (B, 1); tail rows of the last tile are garbage
    # (computed from out-of-bounds reads) and are simply dropped here.
    return out.reshape(nb * tile_b)[:B].reshape(B, 1)


# --------------------------------------------------------------------------- #
# Parameters
# --------------------------------------------------------------------------- #
def init_params(key, d_in, h1=512, h2=256):
    """Deterministic synthetic f32 parameters (PyTorch-Linear-style uniform init),
    stored as (in, out) matrices."""
    ks = jax.random.split(key, 6)

    def lin(kw, kb, fan_in, fan_out):
        bound = 1.0 / jnp.sqrt(fan_in)
        w = jax.random.uniform(kw, (fan_in, fan_out), jnp.float32, -bound, bound)
        b = jax.random.uniform(kb, (1, fan_out), jnp.float32, -bound, bound)
        return w, b

    w1, b1 = lin(ks[0], ks[1], d_in, h1)
    w2, b2 = lin(ks[2], ks[3], h1, h2)
    w3, b3 = lin(ks[4], ks[5], h2, 1)
    return (w1, b1, w2, b2, w3, b3)


def prepare_params(params_f32):
    """One-time (hoisted out of the training step) conversion to kernel layout:
    bf16 for the two big weight matrices, f32 biases, (1, 256) head row."""
    w1, b1, w2, b2, w3, b3 = params_f32
    return (w1.astype(jnp.bfloat16), b1.astype(jnp.float32),
            w2.astype(jnp.bfloat16), b2.astype(jnp.float32),
            w3.reshape(1, -1).astype(jnp.float32),
            b3.reshape(1, 1).astype(jnp.float32))


# --------------------------------------------------------------------------- #
# References
# --------------------------------------------------------------------------- #
def _reference_mixed(img, params_f32):
    """JAX reference of the mixed-precision computation the kernel performs."""
    w1, b1, w2, b2, w3, b3 = params_f32
    x = img.reshape(img.shape[0], -1).astype(jnp.bfloat16)
    h1 = jnp.dot(x, w1.astype(jnp.bfloat16),
                 preferred_element_type=jnp.float32) + b1
    h1 = jnp.where(h1 > 0, h1, 0.2 * h1)
    h2 = jnp.dot(h1.astype(jnp.bfloat16), w2.astype(jnp.bfloat16),
                 preferred_element_type=jnp.float32) + b2
    h2 = jnp.where(h2 > 0, h2, 0.2 * h2)
    return jax.nn.sigmoid(h2 @ w3 + b3)


def _reference_f32(img, params_f32):
    """Full-precision reference of the original PyTorch module."""
    w1, b1, w2, b2, w3, b3 = params_f32
    x = img.reshape(img.shape[0], -1)
    h = x @ w1 + b1
    h = jnp.where(h > 0, h, 0.2 * h)
    h = h @ w2 + b2
    h = jnp.where(h > 0, h, 0.2 * h)
    return jax.nn.sigmoid(h @ w3 + b3)


# --------------------------------------------------------------------------- #
# Main
# --------------------------------------------------------------------------- #
if __name__ == "__main__":
    key = jax.random.PRNGKey(0)
    k_img1, k_img2, k_par = jax.random.split(key, 3)

    # Small shapes consistent with the module: channels=1, img_size=16 -> d_in = 256.
    C, H, W = 1, 16, 16
    d_in = C * H * W
    params_f32 = init_params(k_par, d_in)
    kparams = jax.block_until_ready(prepare_params(params_f32))  # hoisted weight casts

    # Case 1: tiny aligned batch (single tile).
    B1 = 8
    img1 = jax.random.normal(k_img1, (B1, C, H, W), jnp.float32)
    out1 = jax.block_until_ready(discriminator_forward(img1, kparams))
    assert out1.shape == (B1, 1)
    assert jnp.allclose(out1, _reference_mixed(img1, params_f32), atol=2e-3, rtol=2e-3), \
        "mismatch vs mixed-precision JAX reference (case 1)"
    assert jnp.allclose(out1, _reference_f32(img1, params_f32), atol=5e-2, rtol=5e-2), \
        "mismatch vs full-f32 JAX reference (case 1)"

    # Case 2: ragged batch -> two tiles (megacore path) + unpadded partial tail block.
    B2 = 37
    img2 = jax.random.normal(k_img2, (B2, C, H, W), jnp.float32)
    out2 = jax.block_until_ready(discriminator_forward(img2, kparams))
    assert out2.shape == (B2, 1)
    assert jnp.allclose(out2, _reference_mixed(img2, params_f32), atol=2e-3, rtol=2e-3), \
        "mismatch vs mixed-precision JAX reference (case 2)"
    assert jnp.allclose(out2, _reference_f32(img2, params_f32), atol=5e-2, rtol=5e-2), \
        "mismatch vs full-f32 JAX reference (case 2)"

    print("KERNEL_OK")
</pallas_src>

<mosaic_0001>
module attributes {stable_mosaic.version = 11 : i64} {
  func.func @discriminator_kernel(%arg0: i32, %arg1: memref<8x256xf32, #tpu.memory_space<vmem>>, %arg2: memref<256x512xbf16, #tpu.memory_space<vmem>>, %arg3: memref<1x512xf32, #tpu.memory_space<vmem>>, %arg4: memref<512x256xbf16, #tpu.memory_space<vmem>>, %arg5: memref<1x256xf32, #tpu.memory_space<vmem>>, %arg6: memref<1x256xf32, #tpu.memory_space<vmem>>, %arg7: memref<1x1xf32, #tpu.memory_space<vmem>>, %arg8: memref<1x1x8xf32, #tpu.memory_space<vmem>>) attributes {dimension_semantics = [#tpu.dimension_semantics<parallel>], iteration_bounds = array<i64: 1>, scalar_prefetch = 0 : i64, scratch_operands = 0 : i64, tpu.core_type = #tpu.core_type<tc>, window_params = [{transform_indices = @transform_0, window_bounds = array<i64: 8, 256>}, {pipeline_mode = #tpu.pipeline_mode<synchronous>, transform_indices = @transform_1, window_bounds = array<i64: 256, 512>}, {pipeline_mode = #tpu.pipeline_mode<synchronous>, transform_indices = @transform_2, window_bounds = array<i64: 1, 512>}, {pipeline_mode = #tpu.pipeline_mode<synchronous>, transform_indices = @transform_3, window_bounds = array<i64: 512, 256>}, {pipeline_mode = #tpu.pipeline_mode<synchronous>, transform_indices = @transform_4, window_bounds = array<i64: 1, 256>}, {pipeline_mode = #tpu.pipeline_mode<synchronous>, transform_indices = @transform_5, window_bounds = array<i64: 1, 256>}, {pipeline_mode = #tpu.pipeline_mode<synchronous>, transform_indices = @transform_6, window_bounds = array<i64: 1, 1>}, {transform_indices = @transform_7, window_bounds = array<i64: 1, 1, 8>}]} {
    %c0 = arith.constant 0 : index
    %c0_0 = arith.constant 0 : index
    %0 = vector.load %arg1[%c0, %c0_0] : memref<8x256xf32, #tpu.memory_space<vmem>>, vector<8x256xf32>
    %1 = arith.truncf %0 : vector<8x256xf32> to vector<8x256xbf16>
    %c0_1 = arith.constant 0 : index
    %c0_2 = arith.constant 0 : index
    %2 = vector.load %arg2[%c0_1, %c0_2] : memref<256x512xbf16, #tpu.memory_space<vmem>>, vector<256x512xbf16>
    %cst = arith.constant dense<0.000000e+00> : vector<8x512xf32>
    %3 = tpu.matmul %1, %2, %cst {dimension_numbers = #tpu.dot_dimension_numbers<[1], [0], [0], [1], [0, 0, 1, 1], [], []>} : vector<8x256xbf16>, vector<256x512xbf16>, vector<8x512xf32> -> vector<8x512xf32>
    %c0_3 = arith.constant 0 : index
    %c0_4 = arith.constant 0 : index
    %4 = vector.load %arg3[%c0_3, %c0_4] : memref<1x512xf32, #tpu.memory_space<vmem>>, vector<1x512xf32>
    %5 = vector.broadcast %4 : vector<1x512xf32> to vector<8x512xf32>
    %6 = arith.addf %3, %5 : vector<8x512xf32>
    %cst_5 = arith.constant 0.000000e+00 : f32
    %7 = vector.broadcast %cst_5 : f32 to vector<8x512xf32>
    %8 = arith.cmpf ogt, %6, %7 : vector<8x512xf32>
    %cst_6 = arith.constant 2.000000e-01 : f32
    %9 = vector.broadcast %cst_6 : f32 to vector<8x512xf32>
    %10 = arith.mulf %9, %6 : vector<8x512xf32>
    %11 = arith.select %8, %6, %10 : vector<8x512xi1>, vector<8x512xf32>
    %12 = arith.truncf %11 : vector<8x512xf32> to vector<8x512xbf16>
    %c0_7 = arith.constant 0 : index
    %c0_8 = arith.constant 0 : index
    %13 = vector.load %arg4[%c0_7, %c0_8] : memref<512x256xbf16, #tpu.memory_space<vmem>>, vector<512x256xbf16>
    %cst_9 = arith.constant dense<0.000000e+00> : vector<8x256xf32>
    %14 = tpu.matmul %12, %13, %cst_9 {dimension_numbers = #tpu.dot_dimension_numbers<[1], [0], [0], [1], [0, 0, 1, 1], [], []>} : vector<8x512xbf16>, vector<512x256xbf16>, vector<8x256xf32> -> vector<8x256xf32>
    %c0_10 = arith.constant 0 : index
    %c0_11 = arith.constant 0 : index
    %15 = vector.load %arg5[%c0_10, %c0_11] : memref<1x256xf32, #tpu.memory_space<vmem>>, vector<1x256xf32>
    %16 = vector.broadcast %15 : vector<1x256xf32> to vector<8x256xf32>
    %17 = arith.addf %14, %16 : vector<8x256xf32>
    %cst_12 = arith.constant 0.000000e+00 : f32
    %18 = vector.broadcast %cst_12 : f32 to vector<8x256xf32>
    %19 = arith.cmpf ogt, %17, %18 : vector<8x256xf32>
    %cst_13 = arith.constant 2.000000e-01 : f32
    %20 = vector.broadcast %cst_13 : f32 to vector<8x256xf32>
    %21 = arith.mulf %20, %17 : vector<8x256xf32>
    %22 = arith.select %19, %17, %21 : vector<8x256xi1>, vector<8x256xf32>
    %c0_14 = arith.constant 0 : index
    %c0_15 = arith.constant 0 : index
    %23 = vector.load %arg6[%c0_14, %c0_15] : memref<1x256xf32, #tpu.memory_space<vmem>>, vector<1x256xf32>
    %cst_16 = arith.constant dense<0.000000e+00> : vector<1x8xf32>
    %24 = tpu.matmul %23, %22, %cst_16 {dimension_numbers = #tpu.dot_dimension_numbers<[1], [1], [0], [0], [0, 0, 1, 0], [], []>} : vector<1x256xf32>, vector<8x256xf32>, vector<1x8xf32> -> vector<1x8xf32>
    %c0_17 = arith.constant 0 : index
    %c0_18 = arith.constant 0 : index
    %25 = vector.load %arg7[%c0_17, %c0_18] : memref<1x1xf32, #tpu.memory_space<vmem>>, vector<1x1xf32>
    %26 = vector.broadcast %25 : vector<1x1xf32> to vector<1x8xf32>
    %27 = arith.addf %24, %26 : vector<1x8xf32>
    %cst_19 = arith.constant 0.000000e+00 : f32
    %28 = vector.broadcast %cst_19 : f32 to vector<1x8xf32>
    %29 = arith.subf %28, %27 : vector<1x8xf32>
    %30 = math.exp %29 : vector<1x8xf32>
    %cst_20 = arith.constant 1.000000e+00 : f32
    %31 = vector.broadcast %cst_20 : f32 to vector<1x8xf32>
    %32 = arith.addf %31, %30 : vector<1x8xf32>
    %33 = tpu.reciprocal %32 {approx = true} : vector<1x8xf32> -> vector<1x8xf32>
    %34 = vector.shape_cast %33 : vector<1x8xf32> to vector<1x1x8xf32>
    %c0_21 = arith.constant 0 : index
    %c0_22 = arith.constant 0 : index
    %c0_23 = arith.constant 0 : index
    %35 = vector.load %arg8[%c0_21, %c0_22, %c0_23] : memref<1x1x8xf32, #tpu.memory_space<vmem>>, vector<1x1x8xf32>
    tpu.vector_store %arg8[%c0_21, %c0_22, %c0_23], %34 {strides = array<i32>} : memref<1x1x8xf32, #tpu.memory_space<vmem>>, vector<1x1x8xf32>,
    return
  }
  func.func @transform_0(%arg0: i32) -> (i32, i32) {
    %c0_i32 = arith.constant 0 : i32
    %c0_i32_0 = arith.constant 0 : i32
    return %arg0, %c0_i32 : i32, i32
  }
  func.func @transform_1(%arg0: i32) -> (i32, i32) {
    %c0_i32 = arith.constant 0 : i32
    %c0_i32_0 = arith.constant 0 : i32
    %c0_i32_1 = arith.constant 0 : i32
    return %c0_i32, %c0_i32_0 : i32, i32
  }
  func.func @transform_2(%arg0: i32) -> (i32, i32) {
    %c0_i32 = arith.constant 0 : i32
    %c0_i32_0 = arith.constant 0 : i32
    %c0_i32_1 = arith.constant 0 : i32
    return %c0_i32, %c0_i32_0 : i32, i32
  }
  func.func @transform_3(%arg0: i32) -> (i32, i32) {
    %c0_i32 = arith.constant 0 : i32
    %c0_i32_0 = arith.constant 0 : i32
    %c0_i32_1 = arith.constant 0 : i32
    return %c0_i32, %c0_i32_0 : i32, i32
  }
  func.func @transform_4(%arg0: i32) -> (i32, i32) {
    %c0_i32 = arith.constant 0 : i32
    %c0_i32_0 = arith.constant 0 : i32
    %c0_i32_1 = arith.constant 0 : i32
    return %c0_i32, %c0_i32_0 : i32, i32
  }
  func.func @transform_5(%arg0: i32) -> (i32, i32) {
    %c0_i32 = arith.constant 0 : i32
    %c0_i32_0 = arith.constant 0 : i32
    %c0_i32_1 = arith.constant 0 : i32
    return %c0_i32, %c0_i32_0 : i32, i32
  }
  func.func @transform_6(%arg0: i32) -> (i32, i32) {
    %c0_i32 = arith.constant 0 : i32
    %c0_i32_0 = arith.constant 0 : i32
    %c0_i32_1 = arith.constant 0 : i32
    return %c0_i32, %c0_i32_0 : i32, i32
  }
  func.func @transform_7(%arg0: i32) -> (i32, i32, i32) {
    %c0_i32 = arith.constant 0 : i32
    %c0_i32_0 = arith.constant 0 : i32
    %c0_i32_1 = arith.constant 0 : i32
    return %arg0, %c0_i32, %c0_i32_0 : i32, i32, i32
  }
}

module attributes {stable_mosaic.version = 11 : i64} {
  func.func @discriminator_kernel(%arg0: i32, %arg1: memref<8x256xf32, #tpu.memory_space<vmem>>, %arg2: memref<256x512xbf16, #tpu.memory_space<vmem>>, %arg3: memref<1x512xf32, #tpu.memory_space<vmem>>, %arg4: memref<512x256xbf16, #tpu.memory_space<vmem>>, %arg5: memref<1x256xf32, #tpu.memory_space<vmem>>, %arg6: memref<1x256xf32, #tpu.memory_space<vmem>>, %arg7: memref<1x1xf32, #tpu.memory_space<vmem>>, %arg8: memref<1x1x8xf32, #tpu.memory_space<vmem>>) attributes {dimension_semantics = [#tpu.dimension_semantics<parallel>], iteration_bounds = array<i64: 1>, scalar_prefetch = 0 : i64, scratch_operands = 0 : i64, tpu.core_type = #tpu.core_type<tc>, window_params = [{transform_indices = @transform_0, window_bounds = array<i64: 8, 256>}, {pipeline_mode = #tpu.pipeline_mode<synchronous>, transform_indices = @transform_1, window_bounds = array<i64: 256, 512>}, {pipeline_mode = #tpu.pipeline_mode<synchronous>, transform_indices = @transform_2, window_bounds = array<i64: 1, 512>}, {pipeline_mode = #tpu.pipeline_mode<synchronous>, transform_indices = @transform_3, window_bounds = array<i64: 512, 256>}, {pipeline_mode = #tpu.pipeline_mode<synchronous>, transform_indices = @transform_4, window_bounds = array<i64: 1, 256>}, {pipeline_mode = #tpu.pipeline_mode<synchronous>, transform_indices = @transform_5, window_bounds = array<i64: 1, 256>}, {pipeline_mode = #tpu.pipeline_mode<synchronous>, transform_indices = @transform_6, window_bounds = array<i64: 1, 1>}, {transform_indices = @transform_7, window_bounds = array<i64: 1, 1, 8>}]} {
    %c0 = arith.constant 0 : index
    %c0_0 = arith.constant 0 : index
    %0 = vector.load %arg1[%c0, %c0_0] : memref<8x256xf32, #tpu.memory_space<vmem>>, vector<8x256xf32>
    %1 = arith.truncf %0 : vector<8x256xf32> to vector<8x256xbf16>
    %c0_1 = arith.constant 0 : index
    %c0_2 = arith.constant 0 : index
    %2 = vector.load %arg2[%c0_1, %c0_2] : memref<256x512xbf16, #tpu.memory_space<vmem>>, vector<256x512xbf16>
    %cst = arith.constant dense<0.000000e+00> : vector<8x512xf32>
    %3 = tpu.matmul %1, %2, %cst {dimension_numbers = #tpu.dot_dimension_numbers<[1], [0], [0], [1], [0, 0, 1, 1], [], []>} : vector<8x256xbf16>, vector<256x512xbf16>, vector<8x512xf32> -> vector<8x512xf32>
    %c0_3 = arith.constant 0 : index
    %c0_4 = arith.constant 0 : index
    %4 = vector.load %arg3[%c0_3, %c0_4] : memref<1x512xf32, #tpu.memory_space<vmem>>, vector<1x512xf32>
    %5 = vector.broadcast %4 : vector<1x512xf32> to vector<8x512xf32>
    %6 = arith.addf %3, %5 : vector<8x512xf32>
    %cst_5 = arith.constant 0.000000e+00 : f32
    %7 = vector.broadcast %cst_5 : f32 to vector<8x512xf32>
    %8 = arith.cmpf ogt, %6, %7 : vector<8x512xf32>
    %cst_6 = arith.constant 2.000000e-01 : f32
    %9 = vector.broadcast %cst_6 : f32 to vector<8x512xf32>
    %10 = arith.mulf %9, %6 : vector<8x512xf32>
    %11 = arith.select %8, %6, %10 : vector<8x512xi1>, vector<8x512xf32>
    %12 = arith.truncf %11 : vector<8x512xf32> to vector<8x512xbf16>
    %c0_7 = arith.constant 0 : index
    %c0_8 = arith.constant 0 : index
    %13 = vector.load %arg4[%c0_7, %c0_8] : memref<512x256xbf16, #tpu.memory_space<vmem>>, vector<512x256xbf16>
    %cst_9 = arith.constant dense<0.000000e+00> : vector<8x256xf32>
    %14 = tpu.matmul %12, %13, %cst_9 {dimension_numbers = #tpu.dot_dimension_numbers<[1], [0], [0], [1], [0, 0, 1, 1], [], []>} : vector<8x512xbf16>, vector<512x256xbf16>, vector<8x256xf32> -> vector<8x256xf32>
    %c0_10 = arith.constant 0 : index
    %c0_11 = arith.constant 0 : index
    %15 = vector.load %arg5[%c0_10, %c0_11] : memref<1x256xf32, #tpu.memory_space<vmem>>, vector<1x256xf32>
    %16 = vector.broadcast %15 : vector<1x256xf32> to vector<8x256xf32>
    %17 = arith.addf %14, %16 : vector<8x256xf32>
    %cst_12 = arith.constant 0.000000e+00 : f32
    %18 = vector.broadcast %cst_12 : f32 to vector<8x256xf32>
    %19 = arith.cmpf ogt, %17, %18 : vector<8x256xf32>
    %cst_13 = arith.constant 2.000000e-01 : f32
    %20 = vector.broadcast %cst_13 : f32 to vector<8x256xf32>
    %21 = arith.mulf %20, %17 : vector<8x256xf32>
    %22 = arith.select %19, %17, %21 : vector<8x256xi1>, vector<8x256xf32>
    %c0_14 = arith.constant 0 : index
    %c0_15 = arith.constant 0 : index
    %23 = vector.load %arg6[%c0_14, %c0_15] : memref<1x256xf32, #tpu.memory_space<vmem>>, vector<1x256xf32>
    %cst_16 = arith.constant dense<0.000000e+00> : vector<1x8xf32>
    %24 = tpu.matmul %23, %22, %cst_16 {dimension_numbers = #tpu.dot_dimension_numbers<[1], [1], [0], [0], [0, 0, 1, 0], [], []>} : vector<1x256xf32>, vector<8x256xf32>, vector<1x8xf32> -> vector<1x8xf32>
    %c0_17 = arith.constant 0 : index
    %c0_18 = arith.constant 0 : index
    %25 = vector.load %arg7[%c0_17, %c0_18] : memref<1x1xf32, #tpu.memory_space<vmem>>, vector<1x1xf32>
    %26 = vector.broadcast %25 : vector<1x1xf32> to vector<1x8xf32>
    %27 = arith.addf %24, %26 : vector<1x8xf32>
    %cst_19 = arith.constant 0.000000e+00 : f32
    %28 = vector.broadcast %cst_19 : f32 to vector<1x8xf32>
    %29 = arith.subf %28, %27 : vector<1x8xf32>
    %30 = math.exp %29 : vector<1x8xf32>
    %cst_20 = arith.constant 1.000000e+00 : f32
    %31 = vector.broadcast %cst_20 : f32 to vector<1x8xf32>
    %32 = arith.addf %31, %30 : vector<1x8xf32>
    %33 = tpu.reciprocal %32 {approx = true} : vector<1x8xf32> -> vector<1x8xf32>
    %34 = vector.shape_cast %33 : vector<1x8xf32> to vector<1x1x8xf32>
    %c0_21 = arith.constant 0 : index
    %c0_22 = arith.constant 0 : index
    %c0_23 = arith.constant 0 : index
    %35 = vector.load %arg8[%c0_21, %c0_22, %c0_23] : memref<1x1x8xf32, #tpu.memory_space<vmem>>, vector<1x1x8xf32>
    tpu.vector_store %arg8[%c0_21, %c0_22, %c0_23], %34 {strides = array<i32>} : memref<1x1x8xf32, #tpu.memory_space<vmem>>, vector<1x1x8xf32>,
    return
  }
  func.func @transform_0(%arg0: i32) -> (i32, i32) {
    %c0_i32 = arith.constant 0 : i32
    %c0_i32_0 = arith.constant 0 : i32
    return %arg0, %c0_i32 : i32, i32
  }
  func.func @transform_1(%arg0: i32) -> (i32, i32) {
    %c0_i32 = arith.constant 0 : i32
    %c0_i32_0 = arith.constant 0 : i32
    %c0_i32_1 = arith.constant 0 : i32
    return %c0_i32, %c0_i32_0 : i32, i32
  }
  func.func @transform_2(%arg0: i32) -> (i32, i32) {
    %c0_i32 = arith.constant 0 : i32
    %c0_i32_0 = arith.constant 0 : i32
    %c0_i32_1 = arith.constant 0 : i32
    return %c0_i32, %c0_i32_0 : i32, i32
  }
  func.func @transform_3(%arg0: i32) -> (i32, i32) {
    %c0_i32 = arith.constant 0 : i32
    %c0_i32_0 = arith.constant 0 : i32
    %c0_i32_1 = arith.constant 0 : i32
    return %c0_i32, %c0_i32_0 : i32, i32
  }
  func.func @transform_4(%arg0: i32) -> (i32, i32) {
    %c0_i32 = arith.constant 0 : i32
    %c0_i32_0 = arith.constant 0 : i32
    %c0_i32_1 = arith.constant 0 : i32
    return %c0_i32, %c0_i32_0 : i32, i32
  }
  func.func @transform_5(%arg0: i32) -> (i32, i32) {
    %c0_i32 = arith.constant 0 : i32
    %c0_i32_0 = arith.constant 0 : i32
    %c0_i32_1 = arith.constant 0 : i32
    return %c0_i32, %c0_i32_0 : i32, i32
  }
  func.func @transform_6(%arg0: i32) -> (i32, i32) {
    %c0_i32 = arith.constant 0 : i32
    %c0_i32_0 = arith.constant 0 : i32
    %c0_i32_1 = arith.constant 0 : i32
    return %c0_i32, %c0_i32_0 : i32, i32
  }
  func.func @transform_7(%arg0: i32) -> (i32, i32, i32) {
    %c0_i32 = arith.constant 0 : i32
    %c0_i32_0 = arith.constant 0 : i32
    %c0_i32_1 = arith.constant 0 : i32
    return %arg0, %c0_i32, %c0_i32_0 : i32, i32, i32
  }
}

</mosaic_0001>

<bundles_post_ra>
// kernel: tpu_custom_call.1
= control target key start
LH: loop header
LB: loop body
LE: loop exit
PB: predicated region body
PF: predicated region fallthrough
CT: control target
= control target key end

     0   :  { %s1749_s0 = inlined_call_operand.hbm [shape: f32[8,256], index: 0, kind: input, shape index: {}]   ;;  %s1750_s1 = inlined_call_operand.hbm [shape: bf16[256,512], index: 1, kind: input, shape index: {}]   ;;  %s1751_s2 = inlined_call_operand.vmem [shape: f32[1,512], index: 2, kind: input, shape index: {}]   ;;  %s1752_s3 = inlined_call_operand.hbm [shape: bf16[512,256], index: 3, kind: input, shape index: {}]   ;;  %s1753_s4 = inlined_call_operand.vmem [shape: f32[1,256], index: 4, kind: input, shape index: {}]   ;;  %s1754_s5 = inlined_call_operand.vmem [shape: f32[1,256], index: 5, kind: input, shape index: {}]   ;;  %s1755_s6 = inlined_call_operand.<no memory space> [shape: f32[1,1], index: 6, kind: input, shape index: {}]   ;;  %s1756_s7 = inlined_call_operand.hbm [shape: f32[1,1,8], index: 7, kind: output, shape index: {}]  }
   0x1   :  { %v12_v0 = vstv %s1755_s6 }
   0x2   :  { %13 = vst [vmem:[#allocation2] sm:$0x1] %v12_v0 }
   0x3   :  { %14 = vsyncpa [#allocation4], 0 }
   0x4   :  { %15 = vsyncpa [#allocation7], 0 }
   0x5   :  { %16 = vsyncpa [#allocation5], 0  ;;  %s1609_s26 = smov [#allocation6]   ;;  %s1515_s30 = scalar_lea.hbm %s1750_s1, 8192 }
   0x6   :  { %s32_s27 = sshll.u32 %s1609_s26, 4  ;;  %p1516_p0 = scmp.ne.s32.totalorder %s1750_s1, %s1515_s30  ;;  %s33_s27 = int_to_ptr.vmem [resolvable:$true] %s32_s27 }
   0x7   :  { %p1519_p1 = scmp.lt.u32.totalorder %s1515_s30, %s1750_s1 }
   0x9   :  { %p1521_p2 = pnand %p1519_p1, %p1516_p0 }
   0xb   :  { %1524 = shalt.err (!%p1521_p2)
}
   0xc   :  { %s1525_s6 = scalar_lea.vmem %s33_s27, 8192  ;;  %p1530_p4 = scmp.lt.s32.totalorder %s33_s27, %s33_s27 }
   0xd   :  { %p1526_p3 = scmp.ne.s32.totalorder %s33_s27, %s1525_s6  ;;  %p1531_p5 = scmp.lt.s32.totalorder %s1525_s6, %s1525_s6 }
   0xf   :  { %p1532_p6 = por %p1531_p5, %p1530_p4 }
  0x11   :  { %p1533_p7 = pnand %p1532_p6, %p1526_p3 }
  0x13   :  { %1536 = shalt.err (!%p1533_p7)
}
  0x14   :  { %s1610_s12 = smov 256   ;;  %s1611_s13 = smov 16  }
  0x15   :  { %38 = dma.hbm_to_vmem [thread:$0]  %s1750_s1, 8192, %s33_s27, [#allocation7], %s1610_s12, %s1610_s12, %s1611_s13  }
  0x16   :  { %s1612_s16 = smov [#allocation3]   ;;  %s1613_s18 = smov [#allocation8]  }
  0x17   :  { %s23_s17 = sshll.u32 %s1612_s16, 4  ;;  %s46_s19 = sshll.u32 %s1613_s18, 4  ;;  %s24_s17 = int_to_ptr.vmem [resolvable:$true] %s23_s17  ;;  %s47_s19 = int_to_ptr.vmem [resolvable:$true] %s46_s19 }
  0x18   :  { %s1537_s22 = scalar_lea.hbm %s1749_s0, 256 }
  0x19   :  { %p1538_p8 = scmp.ne.s32.totalorder %s1749_s0, %s1537_s22  ;;  %p1541_p9 = scmp.lt.u32.totalorder %s1537_s22, %s1749_s0 }
  0x1b   :  { %p1543_p10 = pnand %p1541_p9, %p1538_p8 }
  0x1d   :  { %1546 = shalt.err (!%p1543_p10)
}
  0x1e   :  { %s1547_s1 = scalar_lea.vmem %s24_s17, 256  ;;  %p1552_p12 = scmp.lt.s32.totalorder %s24_s17, %s24_s17 }
  0x1f   :  { %p1548_p11 = scmp.ne.s32.totalorder %s24_s17, %s1547_s1  ;;  %p1553_p13 = scmp.lt.s32.totalorder %s1547_s1, %s1547_s1 }
  0x21   :  { %p1554_p0 = por %p1553_p13, %p1552_p12 }
  0x23   :  { %p1555_p1 = pnand %p1554_p0, %p1548_p11 }
  0x25   :  { %1558 = shalt.err (!%p1555_p1)
}
  0x26   :  { %26 = dma.hbm_to_vmem [thread:$0]  %s1749_s0, 256, %s24_s17, [#allocation4]  }
  0x27   :  { %s1559_s8 = scalar_lea.hbm %s1752_s3, 8192 }
  0x28   :  { %p1560_p2 = scmp.ne.s32.totalorder %s1752_s3, %s1559_s8  ;;  %p1563_p3 = scmp.lt.u32.totalorder %s1559_s8, %s1752_s3 }
  0x2a   :  { %p1565_p4 = pnand %p1563_p3, %p1560_p2 }
  0x2c   :  { %1568 = shalt.err (!%p1565_p4)
}
  0x2d   :  { %s1569_s12 = scalar_lea.vmem %s47_s19, 8192  ;;  %p1574_p6 = scmp.lt.s32.totalorder %s47_s19, %s47_s19 }
  0x2e   :  { %p1570_p5 = scmp.ne.s32.totalorder %s47_s19, %s1569_s12  ;;  %p1575_p7 = scmp.lt.s32.totalorder %s1569_s12, %s1569_s12 }
  0x30   :  { %p1576_p8 = por %p1575_p7, %p1574_p6 }
  0x32   :  { %p1577_p9 = pnand %p1576_p8, %p1570_p5 }
  0x34   :  { %1580 = shalt.err (!%p1577_p9)
}
  0x35   :  { %s1614_s0 = smov 128   ;;  %s1615_s13 = smov 8  }
  0x36   :  { %52 = dma.hbm_to_vmem [thread:$0]  %s1752_s3, 8192, %s47_s19, [#allocation7], %s1614_s0, %s1614_s0, %s1615_s13  }
  0x37   :  { %1603 = dma.done.wait [#allocation4], 256  }
  0x38   :  { %1604 = vsyncadd [#allocation4], 4294967040 }
  0x39   :  { %1605 = dma.done.wait [#allocation7], 16384  }
  0x3a   :  { %1606 = vsyncadd [#allocation7], 4294950912  ;;  %v1319_v1 = vld [vmem:[#allocation6 + $0x4] ss:$16 sps:$4 sm:$0xff]   ;;  %v1321_v2 = vld [vmem:[#allocation6] ss:$16 sps:$4 sm:$0xff]  }
  0x3b   :  { %478 = vmatprep.subr.bf16.mxu1 %v1319_v1  ;;  %v1322_v3 = vld [vmem:[#allocation6 + $0x24] ss:$16 sps:$4 sm:$0xff]   ;;  %v1324_v4 = vld [vmem:[#allocation6 + $0x20] ss:$16 sps:$4 sm:$0xff]   ;;  %v69_v14 = vld [vmem:[#allocation3 + $0x8] sm:$0xff]  ;;  %vm1157_vm6 = vcmask 57344  }
  0x3c   :  { %479 = vmatpush1.bf16.msra.mxu1 %v1321_v2  ;;  %v1325_v5 = vld [vmem:[#allocation6 + $0x44] ss:$16 sps:$4 sm:$0xff]   ;;  %v1327_v6 = vld [vmem:[#allocation6 + $0x40] ss:$16 sps:$4 sm:$0xff]   ;;  %v1697_v15 = vpack.c.bf16 %v69_v14, %v69_v14  ;;  %v1369_v46 = vld [vmem:[#allocation6 + $0xc] ss:$16 sps:$4 sm:$0xff]  }
  0x3d   :  { %480 = vmatprep.subr.bf16.mxu1 %v1322_v3  ;;  %v1328_v7 = vld [vmem:[#allocation6 + $0x64] ss:$16 sps:$4 sm:$0xff]   ;;  %v1330_v8 = vld [vmem:[#allocation6 + $0x60] ss:$16 sps:$4 sm:$0xff]   ;;  %v1367_v48 = vld [vmem:[#allocation6 + $0x8] ss:$16 sps:$4 sm:$0xff]  }
  0x3e   :  { %v1331_v9 = vld [vmem:[#allocation6 + $0x84] ss:$16 sps:$4 sm:$0xff]   ;;  %v1333_v10 = vld [vmem:[#allocation6 + $0x80] ss:$16 sps:$4 sm:$0xff]   ;;  %510 = vmatprep.mubr.bf16.mxu1 %v1697_v15  ;;  %v1372_v50 = vld [vmem:[#allocation6 + $0x2c] ss:$16 sps:$4 sm:$0xff]  }
  0x3f   :  { %v1334_v11 = vld [vmem:[#allocation6 + $0xa4] ss:$16 sps:$4 sm:$0xff]   ;;  %v1336_v12 = vld [vmem:[#allocation6 + $0xa0] ss:$16 sps:$4 sm:$0xff]   ;;  %v1370_v53 = vld [vmem:[#allocation6 + $0x28] ss:$16 sps:$4 sm:$0xff]  }
  0x40   :  { %481 = vmatpush1.bf16.msra.mxu1 %v1324_v4  ;;  %v1337_v13 = vld [vmem:[#allocation6 + $0xc4] ss:$16 sps:$4 sm:$0xff]   ;;  %v1339_v16 = vld [vmem:[#allocation6 + $0xc0] ss:$16 sps:$4 sm:$0xff]   ;;  %v1375_v54 = vld [vmem:[#allocation6 + $0x4c] ss:$16 sps:$4 sm:$0xff]  }
  0x41   :  { %482 = vmatprep.subr.bf16.mxu1 %v1325_v5  ;;  %v1340_v17 = vld [vmem:[#allocation6 + $0xe4] ss:$16 sps:$4 sm:$0xff]   ;;  %v1342_v18 = vld [vmem:[#allocation6 + $0xe0] ss:$16 sps:$4 sm:$0xff]   ;;  %v1373_v57 = vld [vmem:[#allocation6 + $0x48] ss:$16 sps:$4 sm:$0xff]  }
  0x42   :  { %v1343_v19 = vld [vmem:[#allocation6 + $0x104] ss:$16 sps:$4 sm:$0xff]   ;;  %v1345_v20 = vld [vmem:[#allocation6 + $0x100] ss:$16 sps:$4 sm:$0xff]   ;;  %v1378_v58 = vld [vmem:[#allocation6 + $0x6c] ss:$16 sps:$4 sm:$0xff]  }
  0x43   :  { %v1346_v21 = vld [vmem:[#allocation6 + $0x124] ss:$16 sps:$4 sm:$0xff]   ;;  %v1348_v22 = vld [vmem:[#allocation6 + $0x120] ss:$16 sps:$4 sm:$0xff]   ;;  %v1376_v61 = vld [vmem:[#allocation6 + $0x68] ss:$16 sps:$4 sm:$0xff]  }
  0x44   :  { %483 = vmatpush1.bf16.msra.mxu1 %v1327_v6  ;;  %v1349_v23 = vld [vmem:[#allocation6 + $0x144] ss:$16 sps:$4 sm:$0xff]   ;;  %v1351_v24 = vld [vmem:[#allocation6 + $0x140] ss:$16 sps:$4 sm:$0xff]   ;;  %v1381_v62 = vld [vmem:[#allocation6 + $0x8c] ss:$16 sps:$4 sm:$0xff]  }
  0x45   :  { %484 = vmatprep.subr.bf16.mxu1 %v1328_v7  ;;  %v1352_v25 = vld [vmem:[#allocation6 + $0x164] ss:$16 sps:$4 sm:$0xff]   ;;  %v1354_v26 = vld [vmem:[#allocation6 + $0x160] ss:$16 sps:$4 sm:$0xff]   ;;  %v1379_v1 = vld [vmem:[#allocation6 + $0x88] ss:$16 sps:$4 sm:$0xff]  }
  0x46   :  { %v1355_v27 = vld [vmem:[#allocation6 + $0x184] ss:$16 sps:$4 sm:$0xff]   ;;  %v1417_v29 = vld [vmem:[#allocation8] ss:$8 sps:$4 sm:$0xff]   ;;  %v1420_v32 = vld [vmem:[#allocation8 + $0x10] ss:$8 sps:$4 sm:$0xff]  }
  0x47   :  { %v1415_v28 = vld [vmem:[#allocation8 + $0x4] ss:$8 sps:$4 sm:$0xff]   ;;  %v1418_v30 = vld [vmem:[#allocation8 + $0x14] ss:$8 sps:$4 sm:$0xff]   ;;  %v1357_v31 = vld [vmem:[#allocation6 + $0x180] ss:$16 sps:$4 sm:$0xff]  }
  0x48   :  { %485 = vmatpush1.bf16.msra.mxu1 %v1330_v8  ;;  %972 = vmatprep.subr.bf16.mxu0 %v1415_v28  ;;  %v1358_v33 = vld [vmem:[#allocation6 + $0x1a4] ss:$16 sps:$4 sm:$0xff]   ;;  %v1360_v35 = vld [vmem:[#allocation6 + $0x1a0] ss:$16 sps:$4 sm:$0xff]   ;;  %v1384_v2 = vld [vmem:[#allocation6 + $0xac] ss:$16 sps:$4 sm:$0xff]  }
  0x49   :  { %486 = vmatprep.subr.bf16.mxu1 %v1331_v9  ;;  %973 = vmatpush1.bf16.msra.mxu0 %v1417_v29  ;;  %v1421_v34 = vld [vmem:[#allocation8 + $0x24] ss:$8 sps:$4 sm:$0xff]   ;;  %v1423_v36 = vld [vmem:[#allocation8 + $0x20] ss:$8 sps:$4 sm:$0xff]   ;;  %v1424_v38 = vld [vmem:[#allocation8 + $0x34] ss:$8 sps:$4 sm:$0xff]  }
  0x4a   :  { %974 = vmatprep.subr.bf16.mxu0 %v1418_v30  ;;  %v1361_v37 = vld [vmem:[#allocation6 + $0x1c4] ss:$16 sps:$4 sm:$0xff]   ;;  %v1363_v39 = vld [vmem:[#allocation6 + $0x1c0] ss:$16 sps:$4 sm:$0xff]   ;;  %v1382_v5 = vld [vmem:[#allocation6 + $0xa8] ss:$16 sps:$4 sm:$0xff]  }
  0x4b   :  { %v1426_v40 = vld [vmem:[#allocation8 + $0x30] ss:$8 sps:$4 sm:$0xff]   ;;  %v1364_v41 = vld [vmem:[#allocation6 + $0x1e4] ss:$16 sps:$4 sm:$0xff]   ;;  %v1429_v45 = vld [vmem:[#allocation8 + $0x40] ss:$8 sps:$4 sm:$0xff]  }
  0x4c   :  { %487 = vmatpush1.bf16.msra.mxu1 %v1333_v10  ;;  %v1427_v42 = vld [vmem:[#allocation8 + $0x44] ss:$8 sps:$4 sm:$0xff]   ;;  %v1366_v43 = vld [vmem:[#allocation6 + $0x1e0] ss:$16 sps:$4 sm:$0xff]   ;;  %v1430_v47 = vld [vmem:[#allocation8 + $0x54] ss:$8 sps:$4 sm:$0xff]  }
  0x4d   :  { %488 = vmatprep.subr.bf16.mxu1 %v1334_v11  ;;  %975 = vmatpush1.bf16.msra.mxu0 %v1420_v32  ;;  %v68_v44 = vld [vmem:[#allocation3] sm:$0xff]  ;;  %v1433_v52 = vld [vmem:[#allocation8 + $0x64] ss:$8 sps:$4 sm:$0xff]   ;;  %v1435_v55 = vld [vmem:[#allocation8 + $0x60] ss:$8 sps:$4 sm:$0xff]  }
  0x4e   :  { %976 = vmatprep.subr.bf16.mxu0 %v1421_v34  ;;  %v1700_v49 = vpack.c.bf16 %v68_v44, %v68_v44  ;;  %v1432_v51 = vld [vmem:[#allocation8 + $0x50] ss:$8 sps:$4 sm:$0xff]   ;;  %v1436_v56 = vld [vmem:[#allocation8 + $0x74] ss:$8 sps:$4 sm:$0xff]   ;;  %v1439_v60 = vld [vmem:[#allocation8 + $0x84] ss:$8 sps:$4 sm:$0xff]  }
  0x4f   :  { %v1438_v59 = vld [vmem:[#allocation8 + $0x70] ss:$8 sps:$4 sm:$0xff]   ;;  %v1441_v63 = vld [vmem:[#allocation8 + $0x80] ss:$8 sps:$4 sm:$0xff]   ;;  %v1442_v0 = vld [vmem:[#allocation8 + $0x94] ss:$8 sps:$4 sm:$0xff]  }
  0x50   :  { %489 = vmatpush1.bf16.msra.mxu1 %v1336_v12  ;;  %v1444_v3 = vld [vmem:[#allocation8 + $0x90] ss:$8 sps:$4 sm:$0xff]   ;;  %v1445_v4 = vld [vmem:[#allocation8 + $0xa4] ss:$8 sps:$4 sm:$0xff]   ;;  %v1447_v7 = vld [vmem:[#allocation8 + $0xa0] ss:$8 sps:$4 sm:$0xff]  }
  0x51   :  { %490 = vmatprep.subr.bf16.mxu1 %v1337_v13  ;;  %977 = vmatpush1.bf16.msra.mxu0 %v1423_v36  ;;  %v1387_v6 = vld [vmem:[#allocation6 + $0xcc] ss:$16 sps:$4 sm:$0xff]   ;;  %v1385_v9 = vld [vmem:[#allocation6 + $0xc8] ss:$16 sps:$4 sm:$0xff]  }
  0x52   :  { %978 = vmatprep.subr.bf16.mxu0 %v1424_v38  ;;  %v1448_v8 = vld [vmem:[#allocation8 + $0xb4] ss:$8 sps:$4 sm:$0xff]   ;;  %v1450_v11 = vld [vmem:[#allocation8 + $0xb0] ss:$8 sps:$4 sm:$0xff]   ;;  %v1451_v12 = vld [vmem:[#allocation8 + $0xc4] ss:$8 sps:$4 sm:$0xff]   ;;  %v138_v38 = vlaneseq }
  0x53   :  { %v1390_v10 = vld [vmem:[#allocation6 + $0xec] ss:$16 sps:$4 sm:$0xff]   ;;  %v1388_v13 = vld [vmem:[#allocation6 + $0xe8] ss:$16 sps:$4 sm:$0xff]  }
  0x54   :  { %491 = vmatpush1.bf16.msra.mxu1 %v1339_v16  ;;  %v1393_v14 = vld [vmem:[#allocation6 + $0x10c] ss:$16 sps:$4 sm:$0xff]   ;;  %v1406_v28 = vld [vmem:[#allocation6 + $0x1a8] ss:$16 sps:$4 sm:$0xff]  }
  0x55   :  { %492 = vmatprep.subr.bf16.mxu1 %v1340_v17  ;;  %979 = vmatpush1.bf16.msra.mxu0 %v1426_v40  ;;  %v1454_v16 = vld [vmem:[#allocation8 + $0xd4] ss:$8 sps:$4 sm:$0xff]   ;;  %v1391_v17 = vld [vmem:[#allocation6 + $0x108] ss:$16 sps:$4 sm:$0xff]  }
  0x56   :  { %980 = vmatprep.subr.bf16.mxu0 %v1427_v42  ;;  %v1411_v29 = vld [vmem:[#allocation6 + $0x1cc] ss:$16 sps:$4 sm:$0xff]   ;;  %v1409_v30 = vld [vmem:[#allocation6 + $0x1c8] ss:$16 sps:$4 sm:$0xff]  }
  0x57   :  { %v1412_v32 = vld [vmem:[#allocation6 + $0x1e8] ss:$16 sps:$4 sm:$0xff]  }
  0x58   :  { %493 = vmatpush1.bf16.msra.mxu1 %v1342_v18  ;;  %v1396_v18 = vld [vmem:[#allocation6 + $0x12c] ss:$16 sps:$4 sm:$0xff]   ;;  %v1459_v34 = vld [vmem:[#allocation8 + $0xe0] ss:$8 sps:$4 sm:$0xff]   ;;  %v1462_v36 = vld [vmem:[#allocation8 + $0xf0] ss:$8 sps:$4 sm:$0xff]  }
  0x59   :  { %494 = vmatprep.subr.bf16.mxu1 %v1343_v19  ;;  %981 = vmatpush1.bf16.msra.mxu0 %v1429_v45  ;;  %v1456_v19 = vld [vmem:[#allocation8 + $0xd0] ss:$8 sps:$4 sm:$0xff]  }
  0x5a   :  { %982 = vmatprep.subr.bf16.mxu0 %v1430_v47 }
  0x5c   :  { %495 = vmatpush1.bf16.msra.mxu1 %v1345_v20  ;;  %v1394_v20 = vld [vmem:[#allocation6 + $0x128] ss:$16 sps:$4 sm:$0xff]  }
  0x5d   :  { %496 = vmatprep.subr.bf16.mxu1 %v1346_v21  ;;  %983 = vmatpush1.bf16.msra.mxu0 %v1432_v51  ;;  %v1399_v21 = vld [vmem:[#allocation6 + $0x14c] ss:$16 sps:$4 sm:$0xff]  }
  0x5e   :  { %984 = vmatprep.subr.bf16.mxu0 %v1433_v52 }
  0x60   :  { %497 = vmatpush1.bf16.msra.mxu1 %v1348_v22  ;;  %v1397_v22 = vld [vmem:[#allocation6 + $0x148] ss:$16 sps:$4 sm:$0xff]  }
  0x61   :  { %498 = vmatprep.subr.bf16.mxu1 %v1349_v23  ;;  %985 = vmatpush1.bf16.msra.mxu0 %v1435_v55  ;;  %v1402_v23 = vld [vmem:[#allocation6 + $0x16c] ss:$16 sps:$4 sm:$0xff]  }
  0x62   :  { %986 = vmatprep.subr.bf16.mxu0 %v1436_v56  ;;  %v1463_v56 = vld [vmem:[#allocation8 + $0x100] ss:$8 sps:$4 sm:$0xff]  }
  0x64   :  { %499 = vmatpush1.bf16.msra.mxu1 %v1351_v24  ;;  %v1400_v24 = vld [vmem:[#allocation6 + $0x168] ss:$16 sps:$4 sm:$0xff]  }
  0x65   :  { %500 = vmatprep.subr.bf16.mxu1 %v1352_v25  ;;  %987 = vmatpush1.bf16.msra.mxu0 %v1438_v59  ;;  %v1405_v25 = vld [vmem:[#allocation6 + $0x18c] ss:$16 sps:$4 sm:$0xff]   ;;  %v1466_v59 = vld [vmem:[#allocation8 + $0x110] ss:$8 sps:$4 sm:$0xff]  }
  0x66   :  { %988 = vmatprep.subr.bf16.mxu0 %v1439_v60  ;;  %v1471_v60 = vld [vmem:[#allocation8 + $0x124] ss:$8 sps:$4 sm:$0xff]  }
  0x68   :  { %501 = vmatpush1.bf16.msra.mxu1 %v1354_v26  ;;  %v1403_v26 = vld [vmem:[#allocation6 + $0x188] ss:$16 sps:$4 sm:$0xff]  }
  0x69   :  { %502 = vmatprep.subr.bf16.mxu1 %v1355_v27  ;;  %989 = vmatpush1.bf16.msra.mxu0 %v1441_v63  ;;  %v1408_v27 = vld [vmem:[#allocation6 + $0x1ac] ss:$16 sps:$4 sm:$0xff]   ;;  %v1472_v63 = vld [vmem:[#allocation8 + $0x130] ss:$8 sps:$4 sm:$0xff]  }
  0x6a   :  { %990 = vmatprep.subr.bf16.mxu0 %v1442_v0  ;;  %v1477_v0 = vld [vmem:[#allocation8 + $0x144] ss:$8 sps:$4 sm:$0xff]  }
  0x6c   :  { %503 = vmatpush1.bf16.msra.mxu1 %v1357_v31  ;;  %v1414_v31 = vld [vmem:[#allocation6 + $0x1ec] ss:$16 sps:$4 sm:$0xff]  }
  0x6d   :  { %504 = vmatprep.subr.bf16.mxu1 %v1358_v33  ;;  %991 = vmatpush1.bf16.msra.mxu0 %v1444_v3  ;;  %v1457_v33 = vld [vmem:[#allocation8 + $0xe4] ss:$8 sps:$4 sm:$0xff]   ;;  %v1478_v3 = vld [vmem:[#allocation8 + $0x150] ss:$8 sps:$4 sm:$0xff]  }
  0x6e   :  { %992 = vmatprep.subr.bf16.mxu0 %v1445_v4  ;;  %v1483_v4 = vld [vmem:[#allocation8 + $0x164] ss:$8 sps:$4 sm:$0xff]  }
  0x70   :  { %505 = vmatpush1.bf16.msra.mxu1 %v1360_v35  ;;  %v1460_v35 = vld [vmem:[#allocation8 + $0xf4] ss:$8 sps:$4 sm:$0xff]  }
  0x71   :  { %506 = vmatprep.subr.bf16.mxu1 %v1361_v37  ;;  %993 = vmatpush1.bf16.msra.mxu0 %v1447_v7  ;;  %v1465_v37 = vld [vmem:[#allocation8 + $0x104] ss:$8 sps:$4 sm:$0xff]   ;;  %v1484_v7 = vld [vmem:[#allocation8 + $0x170] ss:$8 sps:$4 sm:$0xff]  }
  0x72   :  { %994 = vmatprep.subr.bf16.mxu0 %v1448_v8  ;;  %v1489_v8 = vld [vmem:[#allocation8 + $0x184] ss:$8 sps:$4 sm:$0xff]  }
  0x74   :  { %507 = vmatpush1.bf16.msra.mxu1 %v1363_v39  ;;  %v1705_v39 = vshrl.u32 %v138_v38, 7 }
  0x75   :  { %508 = vmatprep.subr.bf16.mxu1 %v1364_v41  ;;  %995 = vmatpush1.bf16.msra.mxu0 %v1450_v11  ;;  %v1713_v41 = vld [vmem:[%s1751_s2] sm:$0xf] }
  0x76   :  { %996 = vmatprep.subr.bf16.mxu0 %v1451_v12  ;;  %v1708_v40 = vsub.s32 0, %v1705_v39  ;;  %v1716_v42 = vsub.s32 1, %v1705_v39  ;;  %v1490_v11 = vld [vmem:[#allocation8 + $0x190] ss:$8 sps:$4 sm:$0xff]   ;;  %v1495_v12 = vld [vmem:[#allocation8 + $0x1a4] ss:$8 sps:$4 sm:$0xff]  }
  0x78   :  { %509 = vmatpush1.bf16.msra.mxu1 %v1366_v43  ;;  %v141_v43 = vrot.slane %v1713_v41, %v1708_v40  ;;  %v145_v44 = vrot.slane %v1713_v41, %v1716_v42 }
  0x79   :  { %519 = vmatprep.subr.bf16.mxu1 %v1369_v46 }
  0x7b   :  { %511 = vmatmul.mubr.bf16.vlgmr.msra.gmra.mrb[0].mxu1 %v1700_v49 }
  0x7c   :  { %520 = vmatpush1.bf16.msra.mxu1 %v1367_v48  ;;  %551 = vmatprep.mubr.bf16.mxu1 %v1697_v15  ;;  %v1453_v15 = vld [vmem:[#allocation8 + $0xc0] ss:$8 sps:$4 sm:$0xff]  }
  0x7d   :  { %521 = vmatprep.subr.bf16.mxu1 %v1372_v50  ;;  %997 = vmatpush1.bf16.msra.mxu0 %v1453_v15  ;;  %v1496_v15 = vld [vmem:[#allocation8 + $0x1b0] ss:$8 sps:$4 sm:$0xff]  }
  0x7e   :  { %998 = vmatprep.subr.bf16.mxu0 %v1454_v16  ;;  %v1501_v16 = vld [vmem:[#allocation8 + $0x1c4] ss:$8 sps:$4 sm:$0xff]  }
  0x80   :  { %522 = vmatpush1.bf16.msra.mxu1 %v1370_v53 }
  0x81   :  { %523 = vmatprep.subr.bf16.mxu1 %v1375_v54  ;;  %999 = vmatpush1.bf16.msra.mxu0 %v1456_v19  ;;  %v148_v19 = vsub.s32 2, %v1705_v39 }
  0x82   :  { %1000 = vmatprep.subr.bf16.mxu0 %v1457_v33 }
  0x84   :  { %524 = vmatpush1.bf16.msra.mxu1 %v1373_v57 }
  0x85   :  { %525 = vmatprep.subr.bf16.mxu1 %v1378_v58  ;;  %1001 = vmatpush1.bf16.msra.mxu0 %v1459_v34  ;;  %v1468_v58 = vld [vmem:[#allocation8 + $0x114] ss:$8 sps:$4 sm:$0xff]   ;;  %v1508_v34 = vld [vmem:[#allocation8 + $0x1f0] ss:$8 sps:$4 sm:$0xff]  }
  0x86   :  { %1002 = vmatprep.subr.bf16.mxu0 %v1460_v35 }
  0x88   :  { %526 = vmatpush1.bf16.msra.mxu1 %v1376_v61  ;;  %v1469_v61 = vld [vmem:[#allocation8 + $0x120] ss:$8 sps:$4 sm:$0xff]  }
  0x89   :  { %527 = vmatprep.subr.bf16.mxu1 %v1381_v62  ;;  %1003 = vmatpush1.bf16.msra.mxu0 %v1462_v36  ;;  %v1474_v62 = vld [vmem:[#allocation8 + $0x134] ss:$8 sps:$4 sm:$0xff]  }
  0x8a   :  { %1013 = vmatprep.subr.bf16.mxu0 %v1465_v37 }
  0x8c   :  { %528 = vmatpush1.bf16.msra.mxu1 %v1379_v1  ;;  %v1475_v1 = vld [vmem:[#allocation8 + $0x140] ss:$8 sps:$4 sm:$0xff]  }
  0x8d   :  { %529 = vmatprep.subr.bf16.mxu1 %v1384_v2  ;;  %v1480_v2 = vld [vmem:[#allocation8 + $0x154] ss:$8 sps:$4 sm:$0xff]  }
  0x90   :  { %530 = vmatpush1.bf16.msra.mxu1 %v1382_v5  ;;  %v1481_v5 = vld [vmem:[#allocation8 + $0x160] ss:$8 sps:$4 sm:$0xff]  }
  0x91   :  { %531 = vmatprep.subr.bf16.mxu1 %v1387_v6  ;;  %v1486_v6 = vld [vmem:[#allocation8 + $0x174] ss:$8 sps:$4 sm:$0xff]  }
  0x94   :  { %532 = vmatpush1.bf16.msra.mxu1 %v1385_v9  ;;  %v1487_v9 = vld [vmem:[#allocation8 + $0x180] ss:$8 sps:$4 sm:$0xff]  }
  0x95   :  { %533 = vmatprep.subr.bf16.mxu1 %v1390_v10  ;;  %v1492_v10 = vld [vmem:[#allocation8 + $0x194] ss:$8 sps:$4 sm:$0xff]  }
  0x98   :  { %534 = vmatpush1.bf16.msra.mxu1 %v1388_v13  ;;  %v1493_v13 = vld [vmem:[#allocation8 + $0x1a0] ss:$8 sps:$4 sm:$0xff]  }
  0x99   :  { %535 = vmatprep.subr.bf16.mxu1 %v1393_v14  ;;  %v1498_v14 = vld [vmem:[#allocation8 + $0x1b4] ss:$8 sps:$4 sm:$0xff]  }
  0x9c   :  { %536 = vmatpush1.bf16.msra.mxu1 %v1391_v17  ;;  %v1499_v17 = vld [vmem:[#allocation8 + $0x1c0] ss:$8 sps:$4 sm:$0xff]  }
  0x9d   :  { %537 = vmatprep.subr.bf16.mxu1 %v1396_v18  ;;  %v1504_v18 = vld [vmem:[#allocation8 + $0x1d4] ss:$8 sps:$4 sm:$0xff]  }
  0xa0   :  { %538 = vmatpush1.bf16.msra.mxu1 %v1394_v20  ;;  %v152_v20 = vsub.s32 3, %v1705_v39 }
  0xa1   :  { %539 = vmatprep.subr.bf16.mxu1 %v1399_v21  ;;  %v1502_v21 = vld [vmem:[#allocation8 + $0x1d0] ss:$8 sps:$4 sm:$0xff]  }
  0xa4   :  { %540 = vmatpush1.bf16.msra.mxu1 %v1397_v22  ;;  %v1507_v22 = vld [vmem:[#allocation8 + $0x1e4] ss:$8 sps:$4 sm:$0xff]  }
  0xa5   :  { %541 = vmatprep.subr.bf16.mxu1 %v1402_v23  ;;  %v149_v23 = vrot.slane %v1713_v41, %v148_v19 }
  0xa8   :  { %542 = vmatpush1.bf16.msra.mxu1 %v1400_v24  ;;  %v153_v24 = vrot.slane %v1713_v41, %v152_v20  ;;  %v1060_v41 = vld [vmem:[%s1754_s5] sm:$0x3] }
  0xa9   :  { %543 = vmatprep.subr.bf16.mxu1 %v1405_v25  ;;  %v1505_v25 = vld [vmem:[#allocation8 + $0x1e0] ss:$8 sps:$4 sm:$0xff]  }
  0xac   :  { %544 = vmatpush1.bf16.msra.mxu1 %v1403_v26 }
  0xad   :  { %545 = vmatprep.subr.bf16.mxu1 %v1408_v27  ;;  %v1510_v27 = vld [vmem:[#allocation8 + $0x1f4] ss:$8 sps:$4 sm:$0xff]  }
  0xb0   :  { %546 = vmatpush1.bf16.msra.mxu1 %v1406_v28 }
  0xb1   :  { %547 = vmatprep.subr.bf16.mxu1 %v1411_v29 }
  0xb4   :  { %548 = vmatpush1.bf16.msra.mxu1 %v1409_v30 }
  0xb5   :  { %549 = vmatprep.subr.bf16.mxu1 %v1414_v31 }
  0xb8   :  { %550 = vmatpush1.bf16.msra.mxu1 %v1412_v32 }
  0xbb   :  { %552 = vmatmul.mubr.bf16.vlgmr.msra.gmra.mrb[4].mxu1 %v1700_v49 }
 0x14e   :  { %v512_v45 = vpop.f32.mrb[0].mxu1 }
 0x14f   :  { %v513_v46 = vadd.f32 %v512_v45, %v141_v43  ;;  %v514_v47 = vpop.f32.mrb[1].mxu1  ;;  %v1079_v43 = vrot.slane %v1060_v41, %v1716_v42  ;;  %v1616_v45 = vmov 0  }
 0x150   :  { %v515_v48 = vadd.f32 %v514_v47, %v145_v44  ;;  %v516_v49 = vpop.f32.mrb[2].mxu1  ;;  %v1061_v44 = vld [vmem:[#allocation2] sm:$0x1]  ;;  %1318 = vset.pattern.permute.xlu0 %v1616_v45 }
 0x151   :  { %vm560_vm0 = vcmp.gt.f32.partialorder %v513_v46, 0.0  ;;  %v564_v50 = vmul.f32 0.2, %v513_v46  ;;  %v517_v51 = vpop.f32.mrb[3].mxu1  ;;  %1146 = vmatprep.mubr.f32.mxu1 %v1079_v43  ;;  %1064 = vperm.xlu0 %1318, %v1061_v44  }
 0x152   :  { %vm561_vm1 = vcmp.gt.f32.partialorder %v515_v48, 0.0  ;;  %v565_v52 = vmul.f32 0.2, %v515_v48 }
 0x153   :  { %v568_v53 = vsel %vm560_vm0, %v513_v46, %v564_v50  ;;  %v640_v46 = vld [vmem:[%s1753_s4] sm:$0x3]  ;;  %s1617_s4 = smov [#allocation9]  }
 0x154   :  { %v569_v54 = vsel %vm561_vm1, %v515_v48, %v565_v52  ;;  %v572_v57 = vpack.c.bf16 %v568_v53, %v568_v53  ;;  %v645_v47 = vrot.slane %v640_v46, %v1708_v40  ;;  %v649_v48 = vrot.slane %v640_v46, %v1716_v42  ;;  %s1165_s5 = sshll.u32 %s1617_s4, 4  ;;  %s1166_s5 = int_to_ptr.vmem [resolvable:$true] %s1165_s5 }
 0x155   :  { %v573_v55 = vpack.c.bf16 %v569_v54, %v569_v54  ;;  %s1581_s20 = scalar_lea.vmem %s1166_s5, 16  ;;  %s1585_s21 = scalar_lea.vmem %s1166_s5, 32 }
 0x156   :  { %p1582_p10 = scmp.ne.s32.totalorder %s1166_s5, %s1581_s20  ;;  %p1586_p11 = scmp.lt.s32.totalorder %s1166_s5, %s1166_s5 }
 0x157   :  { %1004 = vmatprep.mubr.bf16.mxu0 %v573_v55  ;;  %p1587_p12 = scmp.lt.s32.totalorder %s1585_s21, %s1581_s20 }
 0x158   :  { %1005 = vmatmul.mubr.bf16.vlgmr.msra.gmra.mrb[0].mxu0 %v572_v57 }
 0x159   :  { %1014 = vmatpush1.bf16.msra.mxu0 %v1463_v56  ;;  %p1588_p13 = por %p1587_p12, %p1586_p11 }
 0x15a   :  { %1015 = vmatprep.subr.bf16.mxu0 %v1468_v58 }
 0x15b   :  { %p1589_p0 = pnand %p1588_p13, %p1582_p10 }
 0x15d   :  { %1016 = vmatpush1.bf16.msra.mxu0 %v1466_v59  ;;  %v1075_v59 = vrot.slane %v1060_v41, %v1708_v40 }
 0x15e   :  { %1017 = vmatprep.subr.bf16.mxu0 %v1471_v60 }
 0x161   :  { %1018 = vmatpush1.bf16.msra.mxu0 %v1469_v61 }
 0x162   :  { %1019 = vmatprep.subr.bf16.mxu0 %v1474_v62 }
 0x165   :  { %1020 = vmatpush1.bf16.msra.mxu0 %v1472_v63 }
 0x166   :  { %1021 = vmatprep.subr.bf16.mxu0 %v1477_v0 }
 0x169   :  { %1022 = vmatpush1.bf16.msra.mxu0 %v1475_v1 }
 0x16a   :  { %1023 = vmatprep.subr.bf16.mxu0 %v1480_v2 }
 0x16d   :  { %1024 = vmatpush1.bf16.msra.mxu0 %v1478_v3 }
 0x16e   :  { %1025 = vmatprep.subr.bf16.mxu0 %v1483_v4 }
 0x171   :  { %1026 = vmatpush1.bf16.msra.mxu0 %v1481_v5 }
 0x172   :  { %1027 = vmatprep.subr.bf16.mxu0 %v1486_v6 }
 0x175   :  { %1028 = vmatpush1.bf16.msra.mxu0 %v1484_v7 }
 0x176   :  { %1029 = vmatprep.subr.bf16.mxu0 %v1489_v8 }
 0x179   :  { %1030 = vmatpush1.bf16.msra.mxu0 %v1487_v9 }
 0x17a   :  { %1031 = vmatprep.subr.bf16.mxu0 %v1492_v10 }
 0x17d   :  { %1032 = vmatpush1.bf16.msra.mxu0 %v1490_v11 }
 0x17e   :  { %1033 = vmatprep.subr.bf16.mxu0 %v1495_v12 }
 0x181   :  { %1034 = vmatpush1.bf16.msra.mxu0 %v1493_v13 }
 0x182   :  { %1035 = vmatprep.subr.bf16.mxu0 %v1498_v14 }
 0x185   :  { %1036 = vmatpush1.bf16.msra.mxu0 %v1496_v15 }
 0x186   :  { %1037 = vmatprep.subr.bf16.mxu0 %v1501_v16 }
 0x189   :  { %1038 = vmatpush1.bf16.msra.mxu0 %v1499_v17 }
 0x18a   :  { %1039 = vmatprep.subr.bf16.mxu0 %v1504_v18 }
 0x18d   :  { %1040 = vmatpush1.bf16.msra.mxu0 %v1502_v21 }
 0x18e   :  { %v553_v26 = vpop.f32.mrb[4].mxu1  ;;  %1041 = vmatprep.subr.bf16.mxu0 %v1507_v22 }
 0x18f   :  { %v554_v28 = vadd.f32 %v553_v26, %v149_v23  ;;  %v555_v29 = vpop.f32.mrb[5].mxu1 }
 0x190   :  { %v556_v30 = vadd.f32 %v555_v29, %v153_v24  ;;  %v557_v31 = vpop.f32.mrb[6].mxu1 }
 0x191   :  { %vm562_vm2 = vcmp.gt.f32.partialorder %v554_v28, 0.0  ;;  %v566_v32 = vmul.f32 0.2, %v554_v28  ;;  %v558_v33 = vpop.f32.mrb[7].mxu1  ;;  %1042 = vmatpush1.bf16.msra.mxu0 %v1505_v25 }
 0x192   :  { %vm563_vm3 = vcmp.gt.f32.partialorder %v556_v30, 0.0  ;;  %v567_v35 = vmul.f32 0.2, %v556_v30  ;;  %1043 = vmatprep.subr.bf16.mxu0 %v1510_v27 }
 0x193   :  { %v570_v36 = vsel %vm562_vm2, %v554_v28, %v566_v32 }
 0x194   :  { %v571_v37 = vsel %vm563_vm3, %v556_v30, %v567_v35  ;;  %v574_v39 = vpack.c.bf16 %v570_v36, %v570_v36 }
 0x195   :  { %1044 = vmatpush1.bf16.msra.mxu0 %v1508_v34  ;;  %v575_v38 = vpack.c.bf16 %v571_v37, %v571_v37 }
 0x197   :  { %1045 = vmatprep.mubr.bf16.mxu0 %v575_v38 }
 0x198   :  { %1046 = vmatmul.mubr.bf16.vlgmr.msra.gmra.mrb[0].mxu0 %v574_v39 }
 0x1d0   :  { %v1065_v60 = vpop.permute.xlu0 %1064 }
 0x1d1   :  { %v1070_v42 = vrot.slane %v1065_v60, %v1708_v40 }
 0x26b   :  { %v1047_v49 = vpop.f32.mrb[0].mxu0 }
 0x26c   :  { %v1303_v50 = vadd.f32 %v1047_v49, %v645_v47  ;;  %v1049_v51 = vpop.f32.mrb[1].mxu0 }
 0x26d   :  { %v1304_v52 = vadd.f32 %v1049_v51, %v649_v48  ;;  %v1051_v53 = vpop.f32.mrb[2].mxu0 }
 0x26e   :  { %v1056_v54 = vmul.f32 0.2, %v1303_v50  ;;  %v1052_v55 = vpop.f32.mrb[3].mxu0  ;;  %vm1054_vm4 = vcmp.gt.f32.partialorder %v1303_v50, 0.0 }
 0x26f   :  { %v1057_v56 = vmul.f32 0.2, %v1304_v52  ;;  %vm1055_vm5 = vcmp.gt.f32.partialorder %v1304_v52, 0.0 }
 0x270   :  { %v1058_v58 = vsel %vm1054_vm4, %v1303_v50, %v1056_v54 }
 0x271   :  { %v1059_v57 = vsel %vm1055_vm5, %v1304_v52, %v1057_v56 }
 0x272   :  { %1082 = vmatprep.subr.mxu1 %v1059_v57 }
 0x273   :  { %1083 = vmatpush1.xpose.msra.mxu1 %v1058_v58 }
 0x276   :  { %1147 = vmatmul.mubr.f32.vlgmr.msra.gmra.mrb[8].mxu1 %v1075_v59 }
 0x349   :  { %v1148_v61 = vpop.f32.mrb[8].mxu1 }
 0x34a   :  { %v1149_v62 = vadd.f32 %v1148_v61, %v1070_v42  ;;  %v1150_v63 = vpop.f32.mrb[9].mxu1 }
 0x34c   :  { %v1152_v0 = vsub.f32 0.0, %v1149_v62 }
 0x34e   :  { %v1153_v1 = vmul.f32 1.442695, %v1152_v0 }
 0x350   :  { %1511 = vpow2.f32 %v1153_v1 }
 0x35a   :  { %v1512_v2 = vpop.eup %1511 }
 0x35b   :  { %v1155_v3 = vadd.f32 1.0, %v1512_v2 }
 0x35d   :  { %1513 = vrcp.f32 %v1155_v3 }
 0x367   :  { %v1514_v4 = vpop.eup %1513 }
 0x368   :  { %1158 = vst.msk [vmem:[#allocation9] sm:$0x1] %vm1157_vm6, %v1514_v4 }
 0x369   :  { %1592 = shalt.err (!%p1589_p0)
}
 0x36a   :  { %s1593_s24 = scalar_lea.hbm %s1756_s7, 16 }
 0x36b   :  { %p1594_p1 = scmp.ne.s32.totalorder %s1756_s7, %s1593_s24  ;;  %p1597_p2 = scmp.lt.u32.totalorder %s1593_s24, %s1756_s7 }
 0x36d   :  { %p1599_p3 = pnand %p1597_p2, %p1594_p1 }
 0x36f   :  { %1602 = shalt.err (!%p1599_p3)
}
 0x370   :  { %1168 = dma.vmem_to_hbm [thread:$0]  %s1166_s5, 16, %s1756_s7, [#allocation5]  }
 0x371   :  { %1607 = dma.done.wait [#allocation5], 16  }
 0x372   :  { %1608 = vsyncadd [#allocation5], 4294967280 }
 0x373   :  { %1172 = vsyncpa [#allocation4], 1 }
 0x374   :  { %1173 = vsyncpa [#allocation7], 1 }
 0x375   :  { %1174 = vsyncpa [#allocation5], 1 }

// kernel: tpu_custom_call.1
= control target key start
LH: loop header
LB: loop body
LE: loop exit
PB: predicated region body
PF: predicated region fallthrough
CT: control target
= control target key end

     0   :  { %s1749_s0 = inlined_call_operand.hbm [shape: f32[8,256], index: 0, kind: input, shape index: {}]   ;;  %s1750_s1 = inlined_call_operand.hbm [shape: bf16[256,512], index: 1, kind: input, shape index: {}]   ;;  %s1751_s2 = inlined_call_operand.vmem [shape: f32[1,512], index: 2, kind: input, shape index: {}]   ;;  %s1752_s3 = inlined_call_operand.hbm [shape: bf16[512,256], index: 3, kind: input, shape index: {}]   ;;  %s1753_s4 = inlined_call_operand.vmem [shape: f32[1,256], index: 4, kind: input, shape index: {}]   ;;  %s1754_s5 = inlined_call_operand.vmem [shape: f32[1,256], index: 5, kind: input, shape index: {}]   ;;  %s1755_s6 = inlined_call_operand.<no memory space> [shape: f32[1,1], index: 6, kind: input, shape index: {}]   ;;  %s1756_s7 = inlined_call_operand.hbm [shape: f32[1,1,8], index: 7, kind: output, shape index: {}]  }
   0x1   :  { %v12_v0 = vstv %s1755_s6 }
   0x2   :  { %13 = vst [vmem:[#allocation2] sm:$0x1] %v12_v0 }
   0x3   :  { %14 = vsyncpa [#allocation4], 0 }
   0x4   :  { %15 = vsyncpa [#allocation7], 0 }
   0x5   :  { %16 = vsyncpa [#allocation5], 0  ;;  %s1609_s26 = smov [#allocation6]   ;;  %s1515_s30 = scalar_lea.hbm %s1750_s1, 8192 }
   0x6   :  { %s32_s27 = sshll.u32 %s1609_s26, 4  ;;  %p1516_p0 = scmp.ne.s32.totalorder %s1750_s1, %s1515_s30  ;;  %s33_s27 = int_to_ptr.vmem [resolvable:$true] %s32_s27 }
   0x7   :  { %p1519_p1 = scmp.lt.u32.totalorder %s1515_s30, %s1750_s1 }
   0x9   :  { %p1521_p2 = pnand %p1519_p1, %p1516_p0 }
   0xb   :  { %1524 = shalt.err (!%p1521_p2)
}
   0xc   :  { %s1525_s6 = scalar_lea.vmem %s33_s27, 8192  ;;  %p1530_p4 = scmp.lt.s32.totalorder %s33_s27, %s33_s27 }
   0xd   :  { %p1526_p3 = scmp.ne.s32.totalorder %s33_s27, %s1525_s6  ;;  %p1531_p5 = scmp.lt.s32.totalorder %s1525_s6, %s1525_s6 }
   0xf   :  { %p1532_p6 = por %p1531_p5, %p1530_p4 }
  0x11   :  { %p1533_p7 = pnand %p1532_p6, %p1526_p3 }
  0x13   :  { %1536 = shalt.err (!%p1533_p7)
}
  0x14   :  { %s1610_s12 = smov 256   ;;  %s1611_s13 = smov 16  }
  0x15   :  { %38 = dma.hbm_to_vmem [thread:$0]  %s1750_s1, 8192, %s33_s27, [#allocation7], %s1610_s12, %s1610_s12, %s1611_s13  }
  0x16   :  { %s1612_s16 = smov [#allocation3]   ;;  %s1613_s18 = smov [#allocation8]  }
  0x17   :  { %s23_s17 = sshll.u32 %s1612_s16, 4  ;;  %s46_s19 = sshll.u32 %s1613_s18, 4  ;;  %s24_s17 = int_to_ptr.vmem [resolvable:$true] %s23_s17  ;;  %s47_s19 = int_to_ptr.vmem [resolvable:$true] %s46_s19 }
  0x18   :  { %s1537_s22 = scalar_lea.hbm %s1749_s0, 256 }
  0x19   :  { %p1538_p8 = scmp.ne.s32.totalorder %s1749_s0, %s1537_s22  ;;  %p1541_p9 = scmp.lt.u32.totalorder %s1537_s22, %s1749_s0 }
  0x1b   :  { %p1543_p10 = pnand %p1541_p9, %p1538_p8 }
  0x1d   :  { %1546 = shalt.err (!%p1543_p10)
}
  0x1e   :  { %s1547_s1 = scalar_lea.vmem %s24_s17, 256  ;;  %p1552_p12 = scmp.lt.s32.totalorder %s24_s17, %s24_s17 }
  0x1f   :  { %p1548_p11 = scmp.ne.s32.totalorder %s24_s17, %s1547_s1  ;;  %p1553_p13 = scmp.lt.s32.totalorder %s1547_s1, %s1547_s1 }
  0x21   :  { %p1554_p0 = por %p1553_p13, %p1552_p12 }
  0x23   :  { %p1555_p1 = pnand %p1554_p0, %p1548_p11 }
  0x25   :  { %1558 = shalt.err (!%p1555_p1)
}
  0x26   :  { %26 = dma.hbm_to_vmem [thread:$0]  %s1749_s0, 256, %s24_s17, [#allocation4]  }
  0x27   :  { %s1559_s8 = scalar_lea.hbm %s1752_s3, 8192 }
  0x28   :  { %p1560_p2 = scmp.ne.s32.totalorder %s1752_s3, %s1559_s8  ;;  %p1563_p3 = scmp.lt.u32.totalorder %s1559_s8, %s1752_s3 }
  0x2a   :  { %p1565_p4 = pnand %p1563_p3, %p1560_p2 }
  0x2c   :  { %1568 = shalt.err (!%p1565_p4)
}
  0x2d   :  { %s1569_s12 = scalar_lea.vmem %s47_s19, 8192  ;;  %p1574_p6 = scmp.lt.s32.totalorder %s47_s19, %s47_s19 }
  0x2e   :  { %p1570_p5 = scmp.ne.s32.totalorder %s47_s19, %s1569_s12  ;;  %p1575_p7 = scmp.lt.s32.totalorder %s1569_s12, %s1569_s12 }
  0x30   :  { %p1576_p8 = por %p1575_p7, %p1574_p6 }
  0x32   :  { %p1577_p9 = pnand %p1576_p8, %p1570_p5 }
  0x34   :  { %1580 = shalt.err (!%p1577_p9)
}
  0x35   :  { %s1614_s0 = smov 128   ;;  %s1615_s13 = smov 8  }
  0x36   :  { %52 = dma.hbm_to_vmem [thread:$0]  %s1752_s3, 8192, %s47_s19, [#allocation7], %s1614_s0, %s1614_s0, %s1615_s13  }
  0x37   :  { %1603 = dma.done.wait [#allocation4], 256  }
  0x38   :  { %1604 = vsyncadd [#allocation4], 4294967040 }
  0x39   :  { %1605 = dma.done.wait [#allocation7], 16384  }
  0x3a   :  { %1606 = vsyncadd [#allocation7], 4294950912  ;;  %v1319_v1 = vld [vmem:[#allocation6 + $0x4] ss:$16 sps:$4 sm:$0xff]   ;;  %v1321_v2 = vld [vmem:[#allocation6] ss:$16 sps:$4 sm:$0xff]  }
  0x3b   :  { %478 = vmatprep.subr.bf16.mxu1 %v1319_v1  ;;  %v1322_v3 = vld [vmem:[#allocation6 + $0x24] ss:$16 sps:$4 sm:$0xff]   ;;  %v1324_v4 = vld [vmem:[#allocation6 + $0x20] ss:$16 sps:$4 sm:$0xff]   ;;  %v69_v14 = vld [vmem:[#allocation3 + $0x8] sm:$0xff]  ;;  %vm1157_vm6 = vcmask 57344  }
  0x3c   :  { %479 = vmatpush1.bf16.msra.mxu1 %v1321_v2  ;;  %v1325_v5 = vld [vmem:[#allocation6 + $0x44] ss:$16 sps:$4 sm:$0xff]   ;;  %v1327_v6 = vld [vmem:[#allocation6 + $0x40] ss:$16 sps:$4 sm:$0xff]   ;;  %v1697_v15 = vpack.c.bf16 %v69_v14, %v69_v14  ;;  %v1369_v46 = vld [vmem:[#allocation6 + $0xc] ss:$16 sps:$4 sm:$0xff]  }
  0x3d   :  { %480 = vmatprep.subr.bf16.mxu1 %v1322_v3  ;;  %v1328_v7 = vld [vmem:[#allocation6 + $0x64] ss:$16 sps:$4 sm:$0xff]   ;;  %v1330_v8 = vld [vmem:[#allocation6 + $0x60] ss:$16 sps:$4 sm:$0xff]   ;;  %v1367_v48 = vld [vmem:[#allocation6 + $0x8] ss:$16 sps:$4 sm:$0xff]  }
  0x3e   :  { %v1331_v9 = vld [vmem:[#allocation6 + $0x84] ss:$16 sps:$4 sm:$0xff]   ;;  %v1333_v10 = vld [vmem:[#allocation6 + $0x80] ss:$16 sps:$4 sm:$0xff]   ;;  %510 = vmatprep.mubr.bf16.mxu1 %v1697_v15  ;;  %v1372_v50 = vld [vmem:[#allocation6 + $0x2c] ss:$16 sps:$4 sm:$0xff]  }
  0x3f   :  { %v1334_v11 = vld [vmem:[#allocation6 + $0xa4] ss:$16 sps:$4 sm:$0xff]   ;;  %v1336_v12 = vld [vmem:[#allocation6 + $0xa0] ss:$16 sps:$4 sm:$0xff]   ;;  %v1370_v53 = vld [vmem:[#allocation6 + $0x28] ss:$16 sps:$4 sm:$0xff]  }
  0x40   :  { %481 = vmatpush1.bf16.msra.mxu1 %v1324_v4  ;;  %v1337_v13 = vld [vmem:[#allocation6 + $0xc4] ss:$16 sps:$4 sm:$0xff]   ;;  %v1339_v16 = vld [vmem:[#allocation6 + $0xc0] ss:$16 sps:$4 sm:$0xff]   ;;  %v1375_v54 = vld [vmem:[#allocation6 + $0x4c] ss:$16 sps:$4 sm:$0xff]  }
  0x41   :  { %482 = vmatprep.subr.bf16.mxu1 %v1325_v5  ;;  %v1340_v17 = vld [vmem:[#allocation6 + $0xe4] ss:$16 sps:$4 sm:$0xff]   ;;  %v1342_v18 = vld [vmem:[#allocation6 + $0xe0] ss:$16 sps:$4 sm:$0xff]   ;;  %v1373_v57 = vld [vmem:[#allocation6 + $0x48] ss:$16 sps:$4 sm:$0xff]  }
  0x42   :  { %v1343_v19 = vld [vmem:[#allocation6 + $0x104] ss:$16 sps:$4 sm:$0xff]   ;;  %v1345_v20 = vld [vmem:[#allocation6 + $0x100] ss:$16 sps:$4 sm:$0xff]   ;;  %v1378_v58 = vld [vmem:[#allocation6 + $0x6c] ss:$16 sps:$4 sm:$0xff]  }
  0x43   :  { %v1346_v21 = vld [vmem:[#allocation6 + $0x124] ss:$16 sps:$4 sm:$0xff]   ;;  %v1348_v22 = vld [vmem:[#allocation6 + $0x120] ss:$16 sps:$4 sm:$0xff]   ;;  %v1376_v61 = vld [vmem:[#allocation6 + $0x68] ss:$16 sps:$4 sm:$0xff]  }
  0x44   :  { %483 = vmatpush1.bf16.msra.mxu1 %v1327_v6  ;;  %v1349_v23 = vld [vmem:[#allocation6 + $0x144] ss:$16 sps:$4 sm:$0xff]   ;;  %v1351_v24 = vld [vmem:[#allocation6 + $0x140] ss:$16 sps:$4 sm:$0xff]   ;;  %v1381_v62 = vld [vmem:[#allocation6 + $0x8c] ss:$16 sps:$4 sm:$0xff]  }
  0x45   :  { %484 = vmatprep.subr.bf16.mxu1 %v1328_v7  ;;  %v1352_v25 = vld [vmem:[#allocation6 + $0x164] ss:$16 sps:$4 sm:$0xff]   ;;  %v1354_v26 = vld [vmem:[#allocation6 + $0x160] ss:$16 sps:$4 sm:$0xff]   ;;  %v1379_v1 = vld [vmem:[#allocation6 + $0x88] ss:$16 sps:$4 sm:$0xff]  }
  0x46   :  { %v1355_v27 = vld [vmem:[#allocation6 + $0x184] ss:$16 sps:$4 sm:$0xff]   ;;  %v1417_v29 = vld [vmem:[#allocation8] ss:$8 sps:$4 sm:$0xff]   ;;  %v1420_v32 = vld [vmem:[#allocation8 + $0x10] ss:$8 sps:$4 sm:$0xff]  }
  0x47   :  { %v1415_v28 = vld [vmem:[#allocation8 + $0x4] ss:$8 sps:$4 sm:$0xff]   ;;  %v1418_v30 = vld [vmem:[#allocation8 + $0x14] ss:$8 sps:$4 sm:$0xff]   ;;  %v1357_v31 = vld [vmem:[#allocation6 + $0x180] ss:$16 sps:$4 sm:$0xff]  }
  0x48   :  { %485 = vmatpush1.bf16.msra.mxu1 %v1330_v8  ;;  %972 = vmatprep.subr.bf16.mxu0 %v1415_v28  ;;  %v1358_v33 = vld [vmem:[#allocation6 + $0x1a4] ss:$16 sps:$4 sm:$0xff]   ;;  %v1360_v35 = vld [vmem:[#allocation6 + $0x1a0] ss:$16 sps:$4 sm:$0xff]   ;;  %v1384_v2 = vld [vmem:[#allocation6 + $0xac] ss:$16 sps:$4 sm:$0xff]  }
  0x49   :  { %486 = vmatprep.subr.bf16.mxu1 %v1331_v9  ;;  %973 = vmatpush1.bf16.msra.mxu0 %v1417_v29  ;;  %v1421_v34 = vld [vmem:[#allocation8 + $0x24] ss:$8 sps:$4 sm:$0xff]   ;;  %v1423_v36 = vld [vmem:[#allocation8 + $0x20] ss:$8 sps:$4 sm:$0xff]   ;;  %v1424_v38 = vld [vmem:[#allocation8 + $0x34] ss:$8 sps:$4 sm:$0xff]  }
  0x4a   :  { %974 = vmatprep.subr.bf16.mxu0 %v1418_v30  ;;  %v1361_v37 = vld [vmem:[#allocation6 + $0x1c4] ss:$16 sps:$4 sm:$0xff]   ;;  %v1363_v39 = vld [vmem:[#allocation6 + $0x1c0] ss:$16 sps:$4 sm:$0xff]   ;;  %v1382_v5 = vld [vmem:[#allocation6 + $0xa8] ss:$16 sps:$4 sm:$0xff]  }
  0x4b   :  { %v1426_v40 = vld [vmem:[#allocation8 + $0x30] ss:$8 sps:$4 sm:$0xff]   ;;  %v1364_v41 = vld [vmem:[#allocation6 + $0x1e4] ss:$16 sps:$4 sm:$0xff]   ;;  %v1429_v45 = vld [vmem:[#allocation8 + $0x40] ss:$8 sps:$4 sm:$0xff]  }
  0x4c   :  { %487 = vmatpush1.bf16.msra.mxu1 %v1333_v10  ;;  %v1427_v42 = vld [vmem:[#allocation8 + $0x44] ss:$8 sps:$4 sm:$0xff]   ;;  %v1366_v43 = vld [vmem:[#allocation6 + $0x1e0] ss:$16 sps:$4 sm:$0xff]   ;;  %v1430_v47 = vld [vmem:[#allocation8 + $0x54] ss:$8 sps:$4 sm:$0xff]  }
  0x4d   :  { %488 = vmatprep.subr.bf16.mxu1 %v1334_v11  ;;  %975 = vmatpush1.bf16.msra.mxu0 %v1420_v32  ;;  %v68_v44 = vld [vmem:[#allocation3] sm:$0xff]  ;;  %v1433_v52 = vld [vmem:[#allocation8 + $0x64] ss:$8 sps:$4 sm:$0xff]   ;;  %v1435_v55 = vld [vmem:[#allocation8 + $0x60] ss:$8 sps:$4 sm:$0xff]  }
  0x4e   :  { %976 = vmatprep.subr.bf16.mxu0 %v1421_v34  ;;  %v1700_v49 = vpack.c.bf16 %v68_v44, %v68_v44  ;;  %v1432_v51 = vld [vmem:[#allocation8 + $0x50] ss:$8 sps:$4 sm:$0xff]   ;;  %v1436_v56 = vld [vmem:[#allocation8 + $0x74] ss:$8 sps:$4 sm:$0xff]   ;;  %v1439_v60 = vld [vmem:[#allocation8 + $0x84] ss:$8 sps:$4 sm:$0xff]  }
  0x4f   :  { %v1438_v59 = vld [vmem:[#allocation8 + $0x70] ss:$8 sps:$4 sm:$0xff]   ;;  %v1441_v63 = vld [vmem:[#allocation8 + $0x80] ss:$8 sps:$4 sm:$0xff]   ;;  %v1442_v0 = vld [vmem:[#allocation8 + $0x94] ss:$8 sps:$4 sm:$0xff]  }
  0x50   :  { %489 = vmatpush1.bf16.msra.mxu1 %v1336_v12  ;;  %v1444_v3 = vld [vmem:[#allocation8 + $0x90] ss:$8 sps:$4 sm:$0xff]   ;;  %v1445_v4 = vld [vmem:[#allocation8 + $0xa4] ss:$8 sps:$4 sm:$0xff]   ;;  %v1447_v7 = vld [vmem:[#allocation8 + $0xa0] ss:$8 sps:$4 sm:$0xff]  }
  0x51   :  { %490 = vmatprep.subr.bf16.mxu1 %v1337_v13  ;;  %977 = vmatpush1.bf16.msra.mxu0 %v1423_v36  ;;  %v1387_v6 = vld [vmem:[#allocation6 + $0xcc] ss:$16 sps:$4 sm:$0xff]   ;;  %v1385_v9 = vld [vmem:[#allocation6 + $0xc8] ss:$16 sps:$4 sm:$0xff]  }
  0x52   :  { %978 = vmatprep.subr.bf16.mxu0 %v1424_v38  ;;  %v1448_v8 = vld [vmem:[#allocation8 + $0xb4] ss:$8 sps:$4 sm:$0xff]   ;;  %v1450_v11 = vld [vmem:[#allocation8 + $0xb0] ss:$8 sps:$4 sm:$0xff]   ;;  %v1451_v12 = vld [vmem:[#allocation8 + $0xc4] ss:$8 sps:$4 sm:$0xff]   ;;  %v138_v38 = vlaneseq }
  0x53   :  { %v1390_v10 = vld [vmem:[#allocation6 + $0xec] ss:$16 sps:$4 sm:$0xff]   ;;  %v1388_v13 = vld [vmem:[#allocation6 + $0xe8] ss:$16 sps:$4 sm:$0xff]  }
  0x54   :  { %491 = vmatpush1.bf16.msra.mxu1 %v1339_v16  ;;  %v1393_v14 = vld [vmem:[#allocation6 + $0x10c] ss:$16 sps:$4 sm:$0xff]   ;;  %v1406_v28 = vld [vmem:[#allocation6 + $0x1a8] ss:$16 sps:$4 sm:$0xff]  }
  0x55   :  { %492 = vmatprep.subr.bf16.mxu1 %v1340_v17  ;;  %979 = vmatpush1.bf16.msra.mxu0 %v1426_v40  ;;  %v1454_v16 = vld [vmem:[#allocation8 + $0xd4] ss:$8 sps:$4 sm:$0xff]   ;;  %v1391_v17 = vld [vmem:[#allocation6 + $0x108] ss:$16 sps:$4 sm:$0xff]  }
  0x56   :  { %980 = vmatprep.subr.bf16.mxu0 %v1427_v42  ;;  %v1411_v29 = vld [vmem:[#allocation6 + $0x1cc] ss:$16 sps:$4 sm:$0xff]   ;;  %v1409_v30 = vld [vmem:[#allocation6 + $0x1c8] ss:$16 sps:$4 sm:$0xff]  }
  0x57   :  { %v1412_v32 = vld [vmem:[#allocation6 + $0x1e8] ss:$16 sps:$4 sm:$0xff]  }
  0x58   :  { %493 = vmatpush1.bf16.msra.mxu1 %v1342_v18  ;;  %v1396_v18 = vld [vmem:[#allocation6 + $0x12c] ss:$16 sps:$4 sm:$0xff]   ;;  %v1459_v34 = vld [vmem:[#allocation8 + $0xe0] ss:$8 sps:$4 sm:$0xff]   ;;  %v1462_v36 = vld [vmem:[#allocation8 + $0xf0] ss:$8 sps:$4 sm:$0xff]  }
  0x59   :  { %494 = vmatprep.subr.bf16.mxu1 %v1343_v19  ;;  %981 = vmatpush1.bf16.msra.mxu0 %v1429_v45  ;;  %v1456_v19 = vld [vmem:[#allocation8 + $0xd0] ss:$8 sps:$4 sm:$0xff]  }
  0x5a   :  { %982 = vmatprep.subr.bf16.mxu0 %v1430_v47 }
  0x5c   :  { %495 = vmatpush1.bf16.msra.mxu1 %v1345_v20  ;;  %v1394_v20 = vld [vmem:[#allocation6 + $0x128] ss:$16 sps:$4 sm:$0xff]  }
  0x5d   :  { %496 = vmatprep.subr.bf16.mxu1 %v1346_v21  ;;  %983 = vmatpush1.bf16.msra.mxu0 %v1432_v51  ;;  %v1399_v21 = vld [vmem:[#allocation6 + $0x14c] ss:$16 sps:$4 sm:$0xff]  }
  0x5e   :  { %984 = vmatprep.subr.bf16.mxu0 %v1433_v52 }
  0x60   :  { %497 = vmatpush1.bf16.msra.mxu1 %v1348_v22  ;;  %v1397_v22 = vld [vmem:[#allocation6 + $0x148] ss:$16 sps:$4 sm:$0xff]  }
  0x61   :  { %498 = vmatprep.subr.bf16.mxu1 %v1349_v23  ;;  %985 = vmatpush1.bf16.msra.mxu0 %v1435_v55  ;;  %v1402_v23 = vld [vmem:[#allocation6 + $0x16c] ss:$16 sps:$4 sm:$0xff]  }
  0x62   :  { %986 = vmatprep.subr.bf16.mxu0 %v1436_v56  ;;  %v1463_v56 = vld [vmem:[#allocation8 + $0x100] ss:$8 sps:$4 sm:$0xff]  }
  0x64   :  { %499 = vmatpush1.bf16.msra.mxu1 %v1351_v24  ;;  %v1400_v24 = vld [vmem:[#allocation6 + $0x168] ss:$16 sps:$4 sm:$0xff]  }
  0x65   :  { %500 = vmatprep.subr.bf16.mxu1 %v1352_v25  ;;  %987 = vmatpush1.bf16.msra.mxu0 %v1438_v59  ;;  %v1405_v25 = vld [vmem:[#allocation6 + $0x18c] ss:$16 sps:$4 sm:$0xff]   ;;  %v1466_v59 = vld [vmem:[#allocation8 + $0x110] ss:$8 sps:$4 sm:$0xff]  }
  0x66   :  { %988 = vmatprep.subr.bf16.mxu0 %v1439_v60  ;;  %v1471_v60 = vld [vmem:[#allocation8 + $0x124] ss:$8 sps:$4 sm:$0xff]  }
  0x68   :  { %501 = vmatpush1.bf16.msra.mxu1 %v1354_v26  ;;  %v1403_v26 = vld [vmem:[#allocation6 + $0x188] ss:$16 sps:$4 sm:$0xff]  }
  0x69   :  { %502 = vmatprep.subr.bf16.mxu1 %v1355_v27  ;;  %989 = vmatpush1.bf16.msra.mxu0 %v1441_v63  ;;  %v1408_v27 = vld [vmem:[#allocation6 + $0x1ac] ss:$16 sps:$4 sm:$0xff]   ;;  %v1472_v63 = vld [vmem:[#allocation8 + $0x130] ss:$8 sps:$4 sm:$0xff]  }
  0x6a   :  { %990 = vmatprep.subr.bf16.mxu0 %v1442_v0  ;;  %v1477_v0 = vld [vmem:[#allocation8 + $0x144] ss:$8 sps:$4 sm:$0xff]  }
  0x6c   :  { %503 = vmatpush1.bf16.msra.mxu1 %v1357_v31  ;;  %v1414_v31 = vld [vmem:[#allocation6 + $0x1ec] ss:$16 sps:$4 sm:$0xff]  }
  0x6d   :  { %504 = vmatprep.subr.bf16.mxu1 %v1358_v33  ;;  %991 = vmatpush1.bf16.msra.mxu0 %v1444_v3  ;;  %v1457_v33 = vld [vmem:[#allocation8 + $0xe4] ss:$8 sps:$4 sm:$0xff]   ;;  %v1478_v3 = vld [vmem:[#allocation8 + $0x150] ss:$8 sps:$4 sm:$0xff]  }
  0x6e   :  { %992 = vmatprep.subr.bf16.mxu0 %v1445_v4  ;;  %v1483_v4 = vld [vmem:[#allocation8 + $0x164] ss:$8 sps:$4 sm:$0xff]  }
  0x70   :  { %505 = vmatpush1.bf16.msra.mxu1 %v1360_v35  ;;  %v1460_v35 = vld [vmem:[#allocation8 + $0xf4] ss:$8 sps:$4 sm:$0xff]  }
  0x71   :  { %506 = vmatprep.subr.bf16.mxu1 %v1361_v37  ;;  %993 = vmatpush1.bf16.msra.mxu0 %v1447_v7  ;;  %v1465_v37 = vld [vmem:[#allocation8 + $0x104] ss:$8 sps:$4 sm:$0xff]   ;;  %v1484_v7 = vld [vmem:[#allocation8 + $0x170] ss:$8 sps:$4 sm:$0xff]  }
  0x72   :  { %994 = vmatprep.subr.bf16.mxu0 %v1448_v8  ;;  %v1489_v8 = vld [vmem:[#allocation8 + $0x184] ss:$8 sps:$4 sm:$0xff]  }
  0x74   :  { %507 = vmatpush1.bf16.msra.mxu1 %v1363_v39  ;;  %v1705_v39 = vshrl.u32 %v138_v38, 7 }
  0x75   :  { %508 = vmatprep.subr.bf16.mxu1 %v1364_v41  ;;  %995 = vmatpush1.bf16.msra.mxu0 %v1450_v11  ;;  %v1713_v41 = vld [vmem:[%s1751_s2] sm:$0xf] }
  0x76   :  { %996 = vmatprep.subr.bf16.mxu0 %v1451_v12  ;;  %v1708_v40 = vsub.s32 0, %v1705_v39  ;;  %v1716_v42 = vsub.s32 1, %v1705_v39  ;;  %v1490_v11 = vld [vmem:[#allocation8 + $0x190] ss:$8 sps:$4 sm:$0xff]   ;;  %v1495_v12 = vld [vmem:[#allocation8 + $0x1a4] ss:$8 sps:$4 sm:$0xff]  }
  0x78   :  { %509 = vmatpush1.bf16.msra.mxu1 %v1366_v43  ;;  %v141_v43 = vrot.slane %v1713_v41, %v1708_v40  ;;  %v145_v44 = vrot.slane %v1713_v41, %v1716_v42 }
  0x79   :  { %519 = vmatprep.subr.bf16.mxu1 %v1369_v46 }
  0x7b   :  { %511 = vmatmul.mubr.bf16.vlgmr.msra.gmra.mrb[0].mxu1 %v1700_v49 }
  0x7c   :  { %520 = vmatpush1.bf16.msra.mxu1 %v1367_v48  ;;  %551 = vmatprep.mubr.bf16.mxu1 %v1697_v15  ;;  %v1453_v15 = vld [vmem:[#allocation8 + $0xc0] ss:$8 sps:$4 sm:$0xff]  }
  0x7d   :  { %521 = vmatprep.subr.bf16.mxu1 %v1372_v50  ;;  %997 = vmatpush1.bf16.msra.mxu0 %v1453_v15  ;;  %v1496_v15 = vld [vmem:[#allocation8 + $0x1b0] ss:$8 sps:$4 sm:$0xff]  }
  0x7e   :  { %998 = vmatprep.subr.bf16.mxu0 %v1454_v16  ;;  %v1501_v16 = vld [vmem:[#allocation8 + $0x1c4] ss:$8 sps:$4 sm:$0xff]  }
  0x80   :  { %522 = vmatpush1.bf16.msra.mxu1 %v1370_v53 }
  0x81   :  { %523 = vmatprep.subr.bf16.mxu1 %v1375_v54  ;;  %999 = vmatpush1.bf16.msra.mxu0 %v1456_v19  ;;  %v148_v19 = vsub.s32 2, %v1705_v39 }
  0x82   :  { %1000 = vmatprep.subr.bf16.mxu0 %v1457_v33 }
  0x84   :  { %524 = vmatpush1.bf16.msra.mxu1 %v1373_v57 }
  0x85   :  { %525 = vmatprep.subr.bf16.mxu1 %v1378_v58  ;;  %1001 = vmatpush1.bf16.msra.mxu0 %v1459_v34  ;;  %v1468_v58 = vld [vmem:[#allocation8 + $0x114] ss:$8 sps:$4 sm:$0xff]   ;;  %v1508_v34 = vld [vmem:[#allocation8 + $0x1f0] ss:$8 sps:$4 sm:$0xff]  }
  0x86   :  { %1002 = vmatprep.subr.bf16.mxu0 %v1460_v35 }
  0x88   :  { %526 = vmatpush1.bf16.msra.mxu1 %v1376_v61  ;;  %v1469_v61 = vld [vmem:[#allocation8 + $0x120] ss:$8 sps:$4 sm:$0xff]  }
  0x89   :  { %527 = vmatprep.subr.bf16.mxu1 %v1381_v62  ;;  %1003 = vmatpush1.bf16.msra.mxu0 %v1462_v36  ;;  %v1474_v62 = vld [vmem:[#allocation8 + $0x134] ss:$8 sps:$4 sm:$0xff]  }
  0x8a   :  { %1013 = vmatprep.subr.bf16.mxu0 %v1465_v37 }
  0x8c   :  { %528 = vmatpush1.bf16.msra.mxu1 %v1379_v1  ;;  %v1475_v1 = vld [vmem:[#allocation8 + $0x140] ss:$8 sps:$4 sm:$0xff]  }
  0x8d   :  { %529 = vmatprep.subr.bf16.mxu1 %v1384_v2  ;;  %v1480_v2 = vld [vmem:[#allocation8 + $0x154] ss:$8 sps:$4 sm:$0xff]  }
  0x90   :  { %530 = vmatpush1.bf16.msra.mxu1 %v1382_v5  ;;  %v1481_v5 = vld [vmem:[#allocation8 + $0x160] ss:$8 sps:$4 sm:$0xff]  }
  0x91   :  { %531 = vmatprep.subr.bf16.mxu1 %v1387_v6  ;;  %v1486_v6 = vld [vmem:[#allocation8 + $0x174] ss:$8 sps:$4 sm:$0xff]  }
  0x94   :  { %532 = vmatpush1.bf16.msra.mxu1 %v1385_v9  ;;  %v1487_v9 = vld [vmem:[#allocation8 + $0x180] ss:$8 sps:$4 sm:$0xff]  }
  0x95   :  { %533 = vmatprep.subr.bf16.mxu1 %v1390_v10  ;;  %v1492_v10 = vld [vmem:[#allocation8 + $0x194] ss:$8 sps:$4 sm:$0xff]  }
  0x98   :  { %534 = vmatpush1.bf16.msra.mxu1 %v1388_v13  ;;  %v1493_v13 = vld [vmem:[#allocation8 + $0x1a0] ss:$8 sps:$4 sm:$0xff]  }
  0x99   :  { %535 = vmatprep.subr.bf16.mxu1 %v1393_v14  ;;  %v1498_v14 = vld [vmem:[#allocation8 + $0x1b4] ss:$8 sps:$4 sm:$0xff]  }
  0x9c   :  { %536 = vmatpush1.bf16.msra.mxu1 %v1391_v17  ;;  %v1499_v17 = vld [vmem:[#allocation8 + $0x1c0] ss:$8 sps:$4 sm:$0xff]  }
  0x9d   :  { %537 = vmatprep.subr.bf16.mxu1 %v1396_v18  ;;  %v1504_v18 = vld [vmem:[#allocation8 + $0x1d4] ss:$8 sps:$4 sm:$0xff]  }
  0xa0   :  { %538 = vmatpush1.bf16.msra.mxu1 %v1394_v20  ;;  %v152_v20 = vsub.s32 3, %v1705_v39 }
  0xa1   :  { %539 = vmatprep.subr.bf16.mxu1 %v1399_v21  ;;  %v1502_v21 = vld [vmem:[#allocation8 + $0x1d0] ss:$8 sps:$4 sm:$0xff]  }
  0xa4   :  { %540 = vmatpush1.bf16.msra.mxu1 %v1397_v22  ;;  %v1507_v22 = vld [vmem:[#allocation8 + $0x1e4] ss:$8 sps:$4 sm:$0xff]  }
  0xa5   :  { %541 = vmatprep.subr.bf16.mxu1 %v1402_v23  ;;  %v149_v23 = vrot.slane %v1713_v41, %v148_v19 }
  0xa8   :  { %542 = vmatpush1.bf16.msra.mxu1 %v1400_v24  ;;  %v153_v24 = vrot.slane %v1713_v41, %v152_v20  ;;  %v1060_v41 = vld [vmem:[%s1754_s5] sm:$0x3] }
  0xa9   :  { %543 = vmatprep.subr.bf16.mxu1 %v1405_v25  ;;  %v1505_v25 = vld [vmem:[#allocation8 + $0x1e0] ss:$8 sps:$4 sm:$0xff]  }
  0xac   :  { %544 = vmatpush1.bf16.msra.mxu1 %v1403_v26 }
  0xad   :  { %545 = vmatprep.subr.bf16.mxu1 %v1408_v27  ;;  %v1510_v27 = vld [vmem:[#allocation8 + $0x1f4] ss:$8 sps:$4 sm:$0xff]  }
  0xb0   :  { %546 = vmatpush1.bf16.msra.mxu1 %v1406_v28 }
  0xb1   :  { %547 = vmatprep.subr.bf16.mxu1 %v1411_v29 }
  0xb4   :  { %548 = vmatpush1.bf16.msra.mxu1 %v1409_v30 }
  0xb5   :  { %549 = vmatprep.subr.bf16.mxu1 %v1414_v31 }
  0xb8   :  { %550 = vmatpush1.bf16.msra.mxu1 %v1412_v32 }
  0xbb   :  { %552 = vmatmul.mubr.bf16.vlgmr.msra.gmra.mrb[4].mxu1 %v1700_v49 }
 0x14e   :  { %v512_v45 = vpop.f32.mrb[0].mxu1 }
 0x14f   :  { %v513_v46 = vadd.f32 %v512_v45, %v141_v43  ;;  %v514_v47 = vpop.f32.mrb[1].mxu1  ;;  %v1079_v43 = vrot.slane %v1060_v41, %v1716_v42  ;;  %v1616_v45 = vmov 0  }
 0x150   :  { %v515_v48 = vadd.f32 %v514_v47, %v145_v44  ;;  %v516_v49 = vpop.f32.mrb[2].mxu1  ;;  %v1061_v44 = vld [vmem:[#allocation2] sm:$0x1]  ;;  %1318 = vset.pattern.permute.xlu0 %v1616_v45 }
 0x151   :  { %vm560_vm0 = vcmp.gt.f32.partialorder %v513_v46, 0.0  ;;  %v564_v50 = vmul.f32 0.2, %v513_v46  ;;  %v517_v51 = vpop.f32.mrb[3].mxu1  ;;  %1146 = vmatprep.mubr.f32.mxu1 %v1079_v43  ;;  %1064 = vperm.xlu0 %1318, %v1061_v44  }
 0x152   :  { %vm561_vm1 = vcmp.gt.f32.partialorder %v515_v48, 0.0  ;;  %v565_v52 = vmul.f32 0.2, %v515_v48 }
 0x153   :  { %v568_v53 = vsel %vm560_vm0, %v513_v46, %v564_v50  ;;  %v640_v46 = vld [vmem:[%s1753_s4] sm:$0x3]  ;;  %s1617_s4 = smov [#allocation9]  }
 0x154   :  { %v569_v54 = vsel %vm561_vm1, %v515_v48, %v565_v52  ;;  %v572_v57 = vpack.c.bf16 %v568_v53, %v568_v53  ;;  %v645_v47 = vrot.slane %v640_v46, %v1708_v40  ;;  %v649_v48 = vrot.slane %v640_v46, %v1716_v42  ;;  %s1165_s5 = sshll.u32 %s1617_s4, 4  ;;  %s1166_s5 = int_to_ptr.vmem [resolvable:$true] %s1165_s5 }
 0x155   :  { %v573_v55 = vpack.c.bf16 %v569_v54, %v569_v54  ;;  %s1581_s20 = scalar_lea.vmem %s1166_s5, 16  ;;  %s1585_s21 = scalar_lea.vmem %s1166_s5, 32 }
 0x156   :  { %p1582_p10 = scmp.ne.s32.totalorder %s1166_s5, %s1581_s20  ;;  %p1586_p11 = scmp.lt.s32.totalorder %s1166_s5, %s1166_s5 }
 0x157   :  { %1004 = vmatprep.mubr.bf16.mxu0 %v573_v55  ;;  %p1587_p12 = scmp.lt.s32.totalorder %s1585_s21, %s1581_s20 }
 0x158   :  { %1005 = vmatmul.mubr.bf16.vlgmr.msra.gmra.mrb[0].mxu0 %v572_v57 }
 0x159   :  { %1014 = vmatpush1.bf16.msra.mxu0 %v1463_v56  ;;  %p1588_p13 = por %p1587_p12, %p1586_p11 }
 0x15a   :  { %1015 = vmatprep.subr.bf16.mxu0 %v1468_v58 }
 0x15b   :  { %p1589_p0 = pnand %p1588_p13, %p1582_p10 }
 0x15d   :  { %1016 = vmatpush1.bf16.msra.mxu0 %v1466_v59  ;;  %v1075_v59 = vrot.slane %v1060_v41, %v1708_v40 }
 0x15e   :  { %1017 = vmatprep.subr.bf16.mxu0 %v1471_v60 }
 0x161   :  { %1018 = vmatpush1.bf16.msra.mxu0 %v1469_v61 }
 0x162   :  { %1019 = vmatprep.subr.bf16.mxu0 %v1474_v62 }
 0x165   :  { %1020 = vmatpush1.bf16.msra.mxu0 %v1472_v63 }
 0x166   :  { %1021 = vmatprep.subr.bf16.mxu0 %v1477_v0 }
 0x169   :  { %1022 = vmatpush1.bf16.msra.mxu0 %v1475_v1 }
 0x16a   :  { %1023 = vmatprep.subr.bf16.mxu0 %v1480_v2 }
 0x16d   :  { %1024 = vmatpush1.bf16.msra.mxu0 %v1478_v3 }
 0x16e   :  { %1025 = vmatprep.subr.bf16.mxu0 %v1483_v4 }
 0x171   :  { %1026 = vmatpush1.bf16.msra.mxu0 %v1481_v5 }
 0x172   :  { %1027 = vmatprep.subr.bf16.mxu0 %v1486_v6 }
 0x175   :  { %1028 = vmatpush1.bf16.msra.mxu0 %v1484_v7 }
 0x176   :  { %1029 = vmatprep.subr.bf16.mxu0 %v1489_v8 }
 0x179   :  { %1030 = vmatpush1.bf16.msra.mxu0 %v1487_v9 }
 0x17a   :  { %1031 = vmatprep.subr.bf16.mxu0 %v1492_v10 }
 0x17d   :  { %1032 = vmatpush1.bf16.msra.mxu0 %v1490_v11 }
 0x17e   :  { %1033 = vmatprep.subr.bf16.mxu0 %v1495_v12 }
 0x181   :  { %1034 = vmatpush1.bf16.msra.mxu0 %v1493_v13 }
 0x182   :  { %1035 = vmatprep.subr.bf16.mxu0 %v1498_v14 }
 0x185   :  { %1036 = vmatpush1.bf16.msra.mxu0 %v1496_v15 }
 0x186   :  { %1037 = vmatprep.subr.bf16.mxu0 %v1501_v16 }
 0x189   :  { %1038 = vmatpush1.bf16.msra.mxu0 %v1499_v17 }
 0x18a   :  { %1039 = vmatprep.subr.bf16.mxu0 %v1504_v18 }
 0x18d   :  { %1040 = vmatpush1.bf16.msra.mxu0 %v1502_v21 }
 0x18e   :  { %v553_v26 = vpop.f32.mrb[4].mxu1  ;;  %1041 = vmatprep.subr.bf16.mxu0 %v1507_v22 }
 0x18f   :  { %v554_v28 = vadd.f32 %v553_v26, %v149_v23  ;;  %v555_v29 = vpop.f32.mrb[5].mxu1 }
 0x190   :  { %v556_v30 = vadd.f32 %v555_v29, %v153_v24  ;;  %v557_v31 = vpop.f32.mrb[6].mxu1 }
 0x191   :  { %vm562_vm2 = vcmp.gt.f32.partialorder %v554_v28, 0.0  ;;  %v566_v32 = vmul.f32 0.2, %v554_v28  ;;  %v558_v33 = vpop.f32.mrb[7].mxu1  ;;  %1042 = vmatpush1.bf16.msra.mxu0 %v1505_v25 }
 0x192   :  { %vm563_vm3 = vcmp.gt.f32.partialorder %v556_v30, 0.0  ;;  %v567_v35 = vmul.f32 0.2, %v556_v30  ;;  %1043 = vmatprep.subr.bf16.mxu0 %v1510_v27 }
 0x193   :  { %v570_v36 = vsel %vm562_vm2, %v554_v28, %v566_v32 }
 0x194   :  { %v571_v37 = vsel %vm563_vm3, %v556_v30, %v567_v35  ;;  %v574_v39 = vpack.c.bf16 %v570_v36, %v570_v36 }
 0x195   :  { %1044 = vmatpush1.bf16.msra.mxu0 %v1508_v34  ;;  %v575_v38 = vpack.c.bf16 %v571_v37, %v571_v37 }
 0x197   :  { %1045 = vmatprep.mubr.bf16.mxu0 %v575_v38 }
 0x198   :  { %1046 = vmatmul.mubr.bf16.vlgmr.msra.gmra.mrb[0].mxu0 %v574_v39 }
 0x1d0   :  { %v1065_v60 = vpop.permute.xlu0 %1064 }
 0x1d1   :  { %v1070_v42 = vrot.slane %v1065_v60, %v1708_v40 }
 0x26b   :  { %v1047_v49 = vpop.f32.mrb[0].mxu0 }
 0x26c   :  { %v1303_v50 = vadd.f32 %v1047_v49, %v645_v47  ;;  %v1049_v51 = vpop.f32.mrb[1].mxu0 }
 0x26d   :  { %v1304_v52 = vadd.f32 %v1049_v51, %v649_v48  ;;  %v1051_v53 = vpop.f32.mrb[2].mxu0 }
 0x26e   :  { %v1056_v54 = vmul.f32 0.2, %v1303_v50  ;;  %v1052_v55 = vpop.f32.mrb[3].mxu0  ;;  %vm1054_vm4 = vcmp.gt.f32.partialorder %v1303_v50, 0.0 }
 0x26f   :  { %v1057_v56 = vmul.f32 0.2, %v1304_v52  ;;  %vm1055_vm5 = vcmp.gt.f32.partialorder %v1304_v52, 0.0 }
 0x270   :  { %v1058_v58 = vsel %vm1054_vm4, %v1303_v50, %v1056_v54 }
 0x271   :  { %v1059_v57 = vsel %vm1055_vm5, %v1304_v52, %v1057_v56 }
 0x272   :  { %1082 = vmatprep.subr.mxu1 %v1059_v57 }
 0x273   :  { %1083 = vmatpush1.xpose.msra.mxu1 %v1058_v58 }
 0x276   :  { %1147 = vmatmul.mubr.f32.vlgmr.msra.gmra.mrb[8].mxu1 %v1075_v59 }
 0x349   :  { %v1148_v61 = vpop.f32.mrb[8].mxu1 }
 0x34a   :  { %v1149_v62 = vadd.f32 %v1148_v61, %v1070_v42  ;;  %v1150_v63 = vpop.f32.mrb[9].mxu1 }
 0x34c   :  { %v1152_v0 = vsub.f32 0.0, %v1149_v62 }
 0x34e   :  { %v1153_v1 = vmul.f32 1.442695, %v1152_v0 }
 0x350   :  { %1511 = vpow2.f32 %v1153_v1 }
 0x35a   :  { %v1512_v2 = vpop.eup %1511 }
 0x35b   :  { %v1155_v3 = vadd.f32 1.0, %v1512_v2 }
 0x35d   :  { %1513 = vrcp.f32 %v1155_v3 }
 0x367   :  { %v1514_v4 = vpop.eup %1513 }
 0x368   :  { %1158 = vst.msk [vmem:[#allocation9] sm:$0x1] %vm1157_vm6, %v1514_v4 }
 0x369   :  { %1592 = shalt.err (!%p1589_p0)
}
 0x36a   :  { %s1593_s24 = scalar_lea.hbm %s1756_s7, 16 }
 0x36b   :  { %p1594_p1 = scmp.ne.s32.totalorder %s1756_s7, %s1593_s24  ;;  %p1597_p2 = scmp.lt.u32.totalorder %s1593_s24, %s1756_s7 }
 0x36d   :  { %p1599_p3 = pnand %p1597_p2, %p1594_p1 }
 0x36f   :  { %1602 = shalt.err (!%p1599_p3)
}
 0x370   :  { %1168 = dma.vmem_to_hbm [thread:$0]  %s1166_s5, 16, %s1756_s7, [#allocation5]  }
 0x371   :  { %1607 = dma.done.wait [#allocation5], 16  }
 0x372   :  { %1608 = vsyncadd [#allocation5], 4294967280 }
 0x373   :  { %1172 = vsyncpa [#allocation4], 1 }
 0x374   :  { %1173 = vsyncpa [#allocation7], 1 }
 0x375   :  { %1174 = vsyncpa [#allocation5], 1 }

</bundles_post_ra>
